<compile_context>
chip_gen: v7x
topology: tpu7x:2x2x1
jax: 0.10.0
libtpu: 0.0.40
codegen_flags: <defaults>
</compile_context>

<pallas_src>
import functools

import jax
import jax.numpy as jnp
from jax.experimental import pallas as pl
from jax.experimental.pallas import tpu as pltpu

_LANE = 128
_VMEM_BUDGET_BYTES = 32 * 1024 * 1024   # per-step working-set target


def _round_up(x, m):
    return ((x + m - 1) // m) * m


def _sep_conv_kernel(x_ref, wdw_ref, wpw_ref, shift_ref, o_ref, *,
                     th, w, activation):
    """One (batch, row-tile) slab per grid step.

    x_ref:     (TH+2, W+2, Cin)     halo'd, spatially padded slab (TRUE Cin)
    wdw_ref:   (3, 3, Cin_p)        depthwise weights (zero in padded lanes)
    wpw_ref:   (Cin_p, Cout_p)      pointwise weight with BN scale folded in
    shift_ref: (1, Cout_p)          conv_bias * bn_scale + bn_shift
    o_ref:     (TH, W, Cout_p)
    """
    cin = x_ref.shape[-1]
    cin_p = wdw_ref.shape[-1]

    x = x_ref[...].astype(jnp.float32)                   # (TH+2, W+2, Cin)
    if cin_p > cin:
        # Widen to the 128-lane width in VMEM (cheap) instead of reading the
        # lane-padded activation from HBM (expensive). Padding is exact: the
        # extra lanes are zero and the padded weight rows are zero.
        x = jnp.concatenate(
            [x, jnp.zeros((x.shape[0], x.shape[1], cin_p - cin), jnp.float32)],
            axis=-1)                                     # (TH+2, W+2, Cin_p)

    wdw = wdw_ref[...].astype(jnp.float32)               # (3, 3, Cin_p)

    # Depthwise 3x3, stride 1, "same" (spatial padding already applied).
    # Hoist the 3 width (sublane) shifts out of the tap loop: 3 materialized
    # strips instead of 9; the remaining row slices are free leading-dim
    # re-indexing.
    strips = [x[:, kx:kx + w, :] for kx in range(3)]     # each (TH+2, W, Cin_p)
    acc = strips[0][0:th] * wdw[0, 0, :]                 # seed with first tap
    for ky in range(3):
        for kx in range(3):
            if ky == 0 and kx == 0:
                continue
            acc = acc + strips[kx][ky:ky + th] * wdw[ky, kx, :]

    # Pointwise 1x1 conv (BN scale pre-folded into wpw) == channel matmul (MXU).
    # TODO(synk): feed bf16 operands to the MXU when the model runs in bf16
    # (keep preferred_element_type=f32 accumulation) for v6e/v7x throughput.
    y = jnp.dot(acc.reshape(th * w, cin_p),
                wpw_ref[...].astype(jnp.float32),
                preferred_element_type=jnp.float32)       # (TH*W, Cout_p)
    y = y + shift_ref[...]                                # bias + BN, folded

    if activation:   # Swish / MemoryEfficientSwish forward: x * sigmoid(x)
        y = y * jax.nn.sigmoid(y)

    o_ref[...] = y.reshape(th, w, -1).astype(o_ref.dtype)


def _choose_row_tile(H, W, cin, cin_p, cout_p, in_itemsize, out_itemsize,
                     budget_bytes=_VMEM_BUDGET_BYTES):
    """Largest row tile whose double-buffered I/O + scratch fits the budget."""
    for th in (256, 128, 64, 32, 16, 8):
        if th > max(8, H):
            continue
        in_tile = (th + 2) * (W + 2) * cin * in_itemsize      # DMA'd slab
        out_tile = th * W * cout_p * out_itemsize
        scratch = ((th + 2) * (W + 2) * cin_p * 4             # widened slab
                   + 3 * (th + 2) * W * cin_p * 4             # hoisted strips
                   + th * W * cin_p * 4                       # dw accumulator
                   + th * W * cout_p * 4)                     # matmul result
        total = 2 * in_tile + 2 * out_tile + scratch + cin_p * cout_p * 4
        if total <= budget_bytes:
            return th
    # TODO(synk): add W / Cout tiling for shapes where even TH=8 overflows.
    return 8


def separable_conv_block(x_nchw, w_dw, w_pw, b_pw, gamma, beta, rmean, rvar,
                         *, eps=1e-3, norm=True, activation=False):
    """Pallas implementation of SeparableConvBlock.forward (eval mode).

    x_nchw: (B, Cin, H, W)    (PyTorch layout)
    w_dw:   (Cin, 1, 3, 3)    depthwise conv weight (groups=Cin, bias=False)
    w_pw:   (Cout, Cin, 1, 1) pointwise conv weight
    b_pw:   (Cout,)           pointwise conv bias
    gamma, beta, rmean, rvar: (Cout,) BatchNorm params / running stats
    """
    B, Cin, H, W = x_nchw.shape
    Cout = w_pw.shape[0]
    cin_p = _round_up(Cin, _LANE)
    cout_p = _round_up(Cout, _LANE)

    # ---- parameter folding (plain JAX, one-time constant work) ----
    if norm:
        scale = gamma / jnp.sqrt(rvar + eps)            # (Cout,)
        shift = beta - rmean * scale                    # (Cout,)
    else:
        scale = jnp.ones((Cout,), jnp.float32)
        shift = jnp.zeros((Cout,), jnp.float32)
    wpw = jnp.transpose(w_pw[:, :, 0, 0], (1, 0))       # (Cin, Cout)
    wpw_f = wpw * scale[None, :]                        # BN scale folded in
    shift_f = (b_pw * scale + shift).reshape(1, Cout)   # bias folded into shift
    wdw = jnp.transpose(w_dw[:, 0, :, :], (1, 2, 0))    # (3, 3, Cin)

    # ---- lane-dense padding of the (tiny) weight tensors only ----
    wdw_p = jnp.pad(wdw, ((0, 0), (0, 0), (0, cin_p - Cin)))
    wpw_p = jnp.pad(wpw_f, ((0, cin_p - Cin), (0, cout_p - Cout)))
    shift_p = jnp.pad(shift_f, ((0, 0), (0, cout_p - Cout)))

    # ---- spatial tiling over rows with a 2-row halo ----
    itemsize = x_nchw.dtype.itemsize
    TH = _choose_row_tile(H, W, Cin, cin_p, cout_p, itemsize, itemsize)
    Hp = _round_up(H, TH)
    n_h = Hp // TH

    x = jnp.transpose(x_nchw, (0, 2, 3, 1))             # NHWC, true Cin
    xp = jnp.pad(x, ((0, 0),
                     (1, 1 + (Hp - H)),                 # halo + row-tile pad
                     (1, 1),                            # "same" pad for k=3
                     (0, 0)))                           # channels untouched
    # Overlapping TH+2-row slabs (overlap = 2 rows). XLA fuses this with the
    # transpose/pad into a single copy; keeps BlockSpecs plain-blocked.
    x_tiles = jnp.stack([xp[:, h * TH:h * TH + TH + 2] for h in range(n_h)],
                        axis=1)                         # (B, n_h, TH+2, W+2, Cin)

    kernel = functools.partial(_sep_conv_kernel, th=TH, w=W,
                               activation=activation)

    out = pl.pallas_call(
        kernel,
        out_shape=jax.ShapeDtypeStruct((B, Hp, W, cout_p), x_nchw.dtype),
        grid_spec=pltpu.PrefetchScalarGridSpec(
            num_scalar_prefetch=0,
            grid=(B, n_h),
            in_specs=[
                pl.BlockSpec((None, None, TH + 2, W + 2, Cin),
                             lambda b, h: (b, h, 0, 0, 0)),
                pl.BlockSpec((3, 3, cin_p), lambda b, h: (0, 0, 0)),
                pl.BlockSpec((cin_p, cout_p), lambda b, h: (0, 0)),
                pl.BlockSpec((1, cout_p), lambda b, h: (0, 0)),
            ],
            out_specs=pl.BlockSpec((None, TH, W, cout_p),
                                   lambda b, h: (b, h, 0, 0)),
        ),
        compiler_params=pltpu.CompilerParams(
            dimension_semantics=("parallel", "parallel"),
            vmem_limit_bytes=48 * 1024 * 1024),
    )(x_tiles, wdw_p, wpw_p, shift_p)

    out = out[:, :H, :, :Cout]                          # drop row/channel pad
    return jnp.transpose(out, (0, 3, 1, 2))             # back to NCHW


def _reference(x, w_dw, w_pw, b_pw, gamma, beta, rmean, rvar,
               *, eps=1e-3, activation=False):
    """Pure-JAX reference (mirrors the PyTorch forward in eval mode)."""
    dw = jax.lax.conv_general_dilated(
        x, w_dw, window_strides=(1, 1), padding=((1, 1), (1, 1)),
        dimension_numbers=("NCHW", "OIHW", "NCHW"),
        feature_group_count=x.shape[1])
    pw = jax.lax.conv_general_dilated(
        dw, w_pw, window_strides=(1, 1), padding="VALID",
        dimension_numbers=("NCHW", "OIHW", "NCHW"))
    pw = pw + b_pw[None, :, None, None]
    y = (pw - rmean[None, :, None, None]) / jnp.sqrt(
        rvar[None, :, None, None] + eps)
    y = y * gamma[None, :, None, None] + beta[None, :, None, None]
    if activation:
        y = y * jax.nn.sigmoid(y)
    return y


if __name__ == "__main__":
    key = jax.random.PRNGKey(0)
    B, Cin, H, W = 2, 4, 16, 16
    Cout = Cin  # out_channels defaults to in_channels

    ks = jax.random.split(key, 6)
    x = jax.random.normal(ks[0], (B, Cin, H, W), dtype=jnp.float32)
    w_dw = jax.random.normal(ks[1], (Cin, 1, 3, 3), dtype=jnp.float32) * 0.3
    w_pw = jax.random.normal(ks[2], (Cout, Cin, 1, 1), dtype=jnp.float32) * 0.3
    b_pw = jax.random.normal(ks[3], (Cout,), dtype=jnp.float32) * 0.1
    gamma = 1.0 + 0.1 * jax.random.normal(ks[4], (Cout,), dtype=jnp.float32)
    beta = 0.1 * jax.random.normal(ks[5], (Cout,), dtype=jnp.float32)
    rmean = 0.05 * jnp.arange(Cout, dtype=jnp.float32)
    rvar = 1.0 + 0.1 * jnp.arange(Cout, dtype=jnp.float32)

    for act in (False, True):
        out = separable_conv_block(x, w_dw, w_pw, b_pw, gamma, beta,
                                   rmean, rvar, activation=act)
        out = jax.block_until_ready(out)
        ref = _reference(x, w_dw, w_pw, b_pw, gamma, beta, rmean, rvar,
                         activation=act)
        assert out.shape == (B, Cout, H, W)
        err = float(jnp.max(jnp.abs(out - ref)))
        assert jnp.allclose(out, ref, rtol=1e-4, atol=1e-4), \
            f"activation={act}: max abs err = {err}"

    print("KERNEL_OK")
</pallas_src>

<mosaic_0001>
module attributes {stable_mosaic.version = 11 : i64} {
  func.func @_sep_conv_kernel(%arg0: i32, %arg1: i32, %arg2: memref<1x1x18x18x4xf32, #tpu.memory_space<vmem>>, %arg3: memref<3x3x128xf32, #tpu.memory_space<vmem>>, %arg4: memref<128x128xf32, #tpu.memory_space<vmem>>, %arg5: memref<1x128xf32, #tpu.memory_space<vmem>>, %arg6: memref<1x16x16x128xf32, #tpu.memory_space<vmem>>) attributes {dimension_semantics = [#tpu.dimension_semantics<parallel>, #tpu.dimension_semantics<parallel>], iteration_bounds = array<i64: 2, 1>, scalar_prefetch = 0 : i64, scratch_operands = 0 : i64, tpu.core_type = #tpu.core_type<tc>, window_params = [{transform_indices = @transform_0, window_bounds = array<i64: 1, 1, 18, 18, 4>}, {pipeline_mode = #tpu.pipeline_mode<synchronous>, transform_indices = @transform_1, window_bounds = array<i64: 3, 3, 128>}, {pipeline_mode = #tpu.pipeline_mode<synchronous>, transform_indices = @transform_2, window_bounds = array<i64: 128, 128>}, {pipeline_mode = #tpu.pipeline_mode<synchronous>, transform_indices = @transform_3, window_bounds = array<i64: 1, 128>}, {transform_indices = @transform_4, window_bounds = array<i64: 1, 16, 16, 128>}]} {
    %c0 = arith.constant 0 : index
    %c0_0 = arith.constant 0 : index
    %c0_1 = arith.constant 0 : index
    %c0_2 = arith.constant 0 : index
    %c0_3 = arith.constant 0 : index
    %0 = vector.load %arg2[%c0, %c0_0, %c0_1, %c0_2, %c0_3] : memref<1x1x18x18x4xf32, #tpu.memory_space<vmem>>, vector<1x1x18x18x4xf32>
    %1 = vector.shape_cast %0 : vector<1x1x18x18x4xf32> to vector<18x18x4xf32>
    %cst = arith.constant 0.000000e+00 : f32
    %2 = vector.broadcast %cst : f32 to vector<18x18x124xf32>
    %3 = tpu.concatenate %1, %2 in 2 : vector<18x18x4xf32>, vector<18x18x124xf32> -> vector<18x18x128xf32>
    %c0_4 = arith.constant 0 : index
    %c0_5 = arith.constant 0 : index
    %c0_6 = arith.constant 0 : index
    %4 = vector.load %arg3[%c0_4, %c0_5, %c0_6] : memref<3x3x128xf32, #tpu.memory_space<vmem>>, vector<3x3x128xf32>
    %5 = vector.extract_strided_slice %3 {offsets = [0, 0, 0], sizes = [18, 16, 128], strides = [1, 1, 1]} : vector<18x18x128xf32> to vector<18x16x128xf32>
    %6 = vector.extract_strided_slice %3 {offsets = [0, 1, 0], sizes = [18, 16, 128], strides = [1, 1, 1]} : vector<18x18x128xf32> to vector<18x16x128xf32>
    %7 = vector.extract_strided_slice %3 {offsets = [0, 2, 0], sizes = [18, 16, 128], strides = [1, 1, 1]} : vector<18x18x128xf32> to vector<18x16x128xf32>
    %8 = vector.extract_strided_slice %5 {offsets = [0, 0, 0], sizes = [16, 16, 128], strides = [1, 1, 1]} : vector<18x16x128xf32> to vector<16x16x128xf32>
    %9 = vector.extract_strided_slice %4 {offsets = [0, 0, 0], sizes = [1, 1, 128], strides = [1, 1, 1]} : vector<3x3x128xf32> to vector<1x1x128xf32>
    %10 = vector.shape_cast %9 : vector<1x1x128xf32> to vector<128xf32>
    %11 = vector.shape_cast %10 : vector<128xf32> to vector<1x1x128xf32>
    %12 = vector.broadcast %11 : vector<1x1x128xf32> to vector<16x16x128xf32>
    %13 = arith.mulf %8, %12 : vector<16x16x128xf32>
    %14 = vector.extract_strided_slice %6 {offsets = [0, 0, 0], sizes = [16, 16, 128], strides = [1, 1, 1]} : vector<18x16x128xf32> to vector<16x16x128xf32>
    %15 = vector.extract_strided_slice %4 {offsets = [0, 1, 0], sizes = [1, 1, 128], strides = [1, 1, 1]} : vector<3x3x128xf32> to vector<1x1x128xf32>
    %16 = vector.shape_cast %15 : vector<1x1x128xf32> to vector<128xf32>
    %17 = vector.shape_cast %16 : vector<128xf32> to vector<1x1x128xf32>
    %18 = vector.broadcast %17 : vector<1x1x128xf32> to vector<16x16x128xf32>
    %19 = arith.mulf %14, %18 : vector<16x16x128xf32>
    %20 = arith.addf %13, %19 : vector<16x16x128xf32>
    %21 = vector.extract_strided_slice %7 {offsets = [0, 0, 0], sizes = [16, 16, 128], strides = [1, 1, 1]} : vector<18x16x128xf32> to vector<16x16x128xf32>
    %22 = vector.extract_strided_slice %4 {offsets = [0, 2, 0], sizes = [1, 1, 128], strides = [1, 1, 1]} : vector<3x3x128xf32> to vector<1x1x128xf32>
    %23 = vector.shape_cast %22 : vector<1x1x128xf32> to vector<128xf32>
    %24 = vector.shape_cast %23 : vector<128xf32> to vector<1x1x128xf32>
    %25 = vector.broadcast %24 : vector<1x1x128xf32> to vector<16x16x128xf32>
    %26 = arith.mulf %21, %25 : vector<16x16x128xf32>
    %27 = arith.addf %20, %26 : vector<16x16x128xf32>
    %28 = vector.extract_strided_slice %5 {offsets = [1, 0, 0], sizes = [16, 16, 128], strides = [1, 1, 1]} : vector<18x16x128xf32> to vector<16x16x128xf32>
    %29 = vector.extract_strided_slice %4 {offsets = [1, 0, 0], sizes = [1, 1, 128], strides = [1, 1, 1]} : vector<3x3x128xf32> to vector<1x1x128xf32>
    %30 = vector.shape_cast %29 : vector<1x1x128xf32> to vector<128xf32>
    %31 = vector.shape_cast %30 : vector<128xf32> to vector<1x1x128xf32>
    %32 = vector.broadcast %31 : vector<1x1x128xf32> to vector<16x16x128xf32>
    %33 = arith.mulf %28, %32 : vector<16x16x128xf32>
    %34 = arith.addf %27, %33 : vector<16x16x128xf32>
    %35 = vector.extract_strided_slice %6 {offsets = [1, 0, 0], sizes = [16, 16, 128], strides = [1, 1, 1]} : vector<18x16x128xf32> to vector<16x16x128xf32>
    %36 = vector.extract_strided_slice %4 {offsets = [1, 1, 0], sizes = [1, 1, 128], strides = [1, 1, 1]} : vector<3x3x128xf32> to vector<1x1x128xf32>
    %37 = vector.shape_cast %36 : vector<1x1x128xf32> to vector<128xf32>
    %38 = vector.shape_cast %37 : vector<128xf32> to vector<1x1x128xf32>
    %39 = vector.broadcast %38 : vector<1x1x128xf32> to vector<16x16x128xf32>
    %40 = arith.mulf %35, %39 : vector<16x16x128xf32>
    %41 = arith.addf %34, %40 : vector<16x16x128xf32>
    %42 = vector.extract_strided_slice %7 {offsets = [1, 0, 0], sizes = [16, 16, 128], strides = [1, 1, 1]} : vector<18x16x128xf32> to vector<16x16x128xf32>
    %43 = vector.extract_strided_slice %4 {offsets = [1, 2, 0], sizes = [1, 1, 128], strides = [1, 1, 1]} : vector<3x3x128xf32> to vector<1x1x128xf32>
    %44 = vector.shape_cast %43 : vector<1x1x128xf32> to vector<128xf32>
    %45 = vector.shape_cast %44 : vector<128xf32> to vector<1x1x128xf32>
    %46 = vector.broadcast %45 : vector<1x1x128xf32> to vector<16x16x128xf32>
    %47 = arith.mulf %42, %46 : vector<16x16x128xf32>
    %48 = arith.addf %41, %47 : vector<16x16x128xf32>
    %49 = vector.extract_strided_slice %5 {offsets = [2, 0, 0], sizes = [16, 16, 128], strides = [1, 1, 1]} : vector<18x16x128xf32> to vector<16x16x128xf32>
    %50 = vector.extract_strided_slice %4 {offsets = [2, 0, 0], sizes = [1, 1, 128], strides = [1, 1, 1]} : vector<3x3x128xf32> to vector<1x1x128xf32>
    %51 = vector.shape_cast %50 : vector<1x1x128xf32> to vector<128xf32>
    %52 = vector.shape_cast %51 : vector<128xf32> to vector<1x1x128xf32>
    %53 = vector.broadcast %52 : vector<1x1x128xf32> to vector<16x16x128xf32>
    %54 = arith.mulf %49, %53 : vector<16x16x128xf32>
    %55 = arith.addf %48, %54 : vector<16x16x128xf32>
    %56 = vector.extract_strided_slice %6 {offsets = [2, 0, 0], sizes = [16, 16, 128], strides = [1, 1, 1]} : vector<18x16x128xf32> to vector<16x16x128xf32>
    %57 = vector.extract_strided_slice %4 {offsets = [2, 1, 0], sizes = [1, 1, 128], strides = [1, 1, 1]} : vector<3x3x128xf32> to vector<1x1x128xf32>
    %58 = vector.shape_cast %57 : vector<1x1x128xf32> to vector<128xf32>
    %59 = vector.shape_cast %58 : vector<128xf32> to vector<1x1x128xf32>
    %60 = vector.broadcast %59 : vector<1x1x128xf32> to vector<16x16x128xf32>
    %61 = arith.mulf %56, %60 : vector<16x16x128xf32>
    %62 = arith.addf %55, %61 : vector<16x16x128xf32>
    %63 = vector.extract_strided_slice %7 {offsets = [2, 0, 0], sizes = [16, 16, 128], strides = [1, 1, 1]} : vector<18x16x128xf32> to vector<16x16x128xf32>
    %64 = vector.extract_strided_slice %4 {offsets = [2, 2, 0], sizes = [1, 1, 128], strides = [1, 1, 1]} : vector<3x3x128xf32> to vector<1x1x128xf32>
    %65 = vector.shape_cast %64 : vector<1x1x128xf32> to vector<128xf32>
    %66 = vector.shape_cast %65 : vector<128xf32> to vector<1x1x128xf32>
    %67 = vector.broadcast %66 : vector<1x1x128xf32> to vector<16x16x128xf32>
    %68 = arith.mulf %63, %67 : vector<16x16x128xf32>
    %69 = arith.addf %62, %68 : vector<16x16x128xf32>
    %70 = vector.shape_cast %69 : vector<16x16x128xf32> to vector<256x128xf32>
    %c0_7 = arith.constant 0 : index
    %c0_8 = arith.constant 0 : index
    %71 = vector.load %arg4[%c0_7, %c0_8] : memref<128x128xf32, #tpu.memory_space<vmem>>, vector<128x128xf32>
    %cst_9 = arith.constant dense<0.000000e+00> : vector<256x128xf32>
    %72 = tpu.matmul %70, %71, %cst_9 {dimension_numbers = #tpu.dot_dimension_numbers<[1], [0], [0], [1], [0, 0, 1, 1], [], []>} : vector<256x128xf32>, vector<128x128xf32>, vector<256x128xf32> -> vector<256x128xf32>
    %c0_10 = arith.constant 0 : index
    %c0_11 = arith.constant 0 : index
    %73 = vector.load %arg5[%c0_10, %c0_11] : memref<1x128xf32, #tpu.memory_space<vmem>>, vector<1x128xf32>
    %74 = vector.broadcast %73 : vector<1x128xf32> to vector<256x128xf32>
    %75 = arith.addf %72, %74 : vector<256x128xf32>
    %76 = vector.shape_cast %75 : vector<256x128xf32> to vector<16x16x128xf32>
    %c0_12 = arith.constant 0 : index
    %c0_13 = arith.constant 0 : index
    %c0_14 = arith.constant 0 : index
    %c0_15 = arith.constant 0 : index
    %77 = vector.load %arg6[%c0_12, %c0_13, %c0_14, %c0_15] : memref<1x16x16x128xf32, #tpu.memory_space<vmem>>, vector<1x16x16x128xf32>
    %78 = vector.shape_cast %77 : vector<1x16x16x128xf32> to vector<16x16x128xf32>
    %79 = vector.shape_cast %76 : vector<16x16x128xf32> to vector<1x16x16x128xf32>
    tpu.vector_store %arg6[%c0_12, %c0_13, %c0_14, %c0_15], %79 {strides = array<i32>} : memref<1x16x16x128xf32, #tpu.memory_space<vmem>>, vector<1x16x16x128xf32>,
    return
  }
  func.func @transform_0(%arg0: i32, %arg1: i32) -> (i32, i32, i32, i32, i32) {
    %c0_i32 = arith.constant 0 : i32
    %c0_i32_0 = arith.constant 0 : i32
    %c0_i32_1 = arith.constant 0 : i32
    %c0_i32_2 = arith.constant 0 : i32
    return %arg0, %arg1, %c0_i32, %c0_i32_0, %c0_i32_1 : i32, i32, i32, i32, i32
  }
  func.func @transform_1(%arg0: i32, %arg1: i32) -> (i32, i32, i32) {
    %c0_i32 = arith.constant 0 : i32
    %c0_i32_0 = arith.constant 0 : i32
    %c0_i32_1 = arith.constant 0 : i32
    %c0_i32_2 = arith.constant 0 : i32
    return %c0_i32, %c0_i32_0, %c0_i32_1 : i32, i32, i32
  }
  func.func @transform_2(%arg0: i32, %arg1: i32) -> (i32, i32) {
    %c0_i32 = arith.constant 0 : i32
    %c0_i32_0 = arith.constant 0 : i32
    %c0_i32_1 = arith.constant 0 : i32
    return %c0_i32, %c0_i32_0 : i32, i32
  }
  func.func @transform_3(%arg0: i32, %arg1: i32) -> (i32, i32) {
    %c0_i32 = arith.constant 0 : i32
    %c0_i32_0 = arith.constant 0 : i32
    %c0_i32_1 = arith.constant 0 : i32
    return %c0_i32, %c0_i32_0 : i32, i32
  }
  func.func @transform_4(%arg0: i32, %arg1: i32) -> (i32, i32, i32, i32) {
    %c0_i32 = arith.constant 0 : i32
    %c0_i32_0 = arith.constant 0 : i32
    %c0_i32_1 = arith.constant 0 : i32
    return %arg0, %arg1, %c0_i32, %c0_i32_0 : i32, i32, i32, i32
  }
}

</mosaic_0001>

<bundles_post_ra>
// kernel: tpu_custom_call.1
= control target key start
LH: loop header
LB: loop body
LE: loop exit
PB: predicated region body
PF: predicated region fallthrough
CT: control target
= control target key end

     0   :  { %9 = vsyncpa [#allocation3], 0  ;;  %s4858_s0 = inlined_call_operand.vmem [shape: f32[2,1,18,18,4], index: 0, kind: input, shape index: {}]   ;;  %s4859_s1 = inlined_call_operand.vmem [shape: f32[3,3,128], index: 1, kind: input, shape index: {}]   ;;  %s4860_s2 = inlined_call_operand.vmem [shape: f32[128,128], index: 2, kind: input, shape index: {}]   ;;  %s4861_s3 = inlined_call_operand.vmem [shape: f32[1,128], index: 3, kind: input, shape index: {}]   ;;  %s4862_s4 = inlined_call_operand.hbm [shape: f32[2,16,16,128], index: 4, kind: output, shape index: {}]  }
   0x1   :  { %11 = vsyncpa [#allocation3 + $0x1], 0  ;;  %s2710_s15 = smov 0   ;;  %s2712_s16 = smov 0  }
   0x2   :  { %s2714_s17 = smov 0   ;;  %s2716_s18 = smov 0  }
   0x3   :  { %s2718_s19 = smov 0   ;;  %s2720_s20 = smov 0  }
   0x4 LB: > { %s2354_s21 = sadd.s32 4294967295, %s2680_s20   ;;  %s2355_s22 = sadd.s32 4294967294, %s2680_s20   ;;  %s2680_s20 = sphi %s2720_s20, %s17_s20   ;;  %s2676_s19 = sphi %s2718_s19, %s4985_s19   ;;  %s2672_s18 = sphi %s2716_s18, %s4984_s18   ;;  %s2668_s17 = sphi %s2714_s17, %s4983_s17   ;;  %s2664_s16 = sphi %s2712_s16, %s4982_s16   ;;  %s2660_s15 = sphi %s2710_s15, %s4981_s15  }
   0x5   : > { %s29_s23 = sadd.s32 1, %s2676_s19  ;;  %s129_s24 = sadd.s32 1, %s2668_s17 }
   0x6   : > { %p31_p0 = scmp.ge.s32.totalorder %s29_s23, 2  ;;  %p139_p1 = scmp.ne.s32.totalorder %s2668_s17, %s2664_s16 }
   0x7   : > { %p140_p2 = scmp.eq.s32.totalorder %s2354_s21, 1  ;;  %p145_p3 = scmp.ne.s32.totalorder %s2664_s16, %s2660_s15 }
   0x8   : > { %s4987_s23 = smov (%p31_p0, %s29_s23), 0  ;;  %p146_p5 = scmp.eq.s32.totalorder %s2355_s22, 1 }
   0x9   : > { %p2750_p4 = por %p140_p2, %p139_p1  ;;  %s124_s26 = ssub.s32 %s2676_s19, %s4987_s23 }
   0xa   : > { %p2358_p6 = scmp.ge.s32.totalorder %s2680_s20, 1  ;;  %p127_p7 = scmp.eq.s32.totalorder %s124_s26, 0 }
   0xb   : > { %p2757_p8 = por %p146_p5, %p145_p3  ;;  %p185_p9 = scmp.lt.s32.totalorder %s2680_s20, 3 }
   0xc   : > { %s2763_s28 = scalar_select %p127_p7, %s2668_s17, %s129_s24  }
   0xd   : > { %p186_p10 = pnand %p2358_p6, %p185_p9 }
   0xf   : > { %189 = sbr.rel (%p186_p10) target bundleno = 577 (0x241), region = 36 }
  0x16   : > { %v1975_v0 = vld [vmem:[%s4860_s2] sm:$0xff]  ;;  %v1976_v1 = vld [vmem:[%s4860_s2 + $0x8] sm:$0xff]  ;;  %v1977_v2 = vld [vmem:[%s4860_s2 + $0x10] sm:$0xff]  ;;  %p215_p11 = scmp.lt.s32.totalorder %s2672_s18, 1  ;;  %v337_v3 = vlaneseq  ;;  %vm279_vm0 = vcmask 31744   ;;  %vm473_vm1 = vcmask 1046528  }
  0x17   : > { %v2496_v4 = vpack.c.bf16 %v1976_v1, %v1975_v0  ;;  %v1978_v5 = vld [vmem:[%s4860_s2 + $0x18] sm:$0xff]  ;;  %v1979_v6 = vld [vmem:[%s4860_s2 + $0x20] sm:$0xff]  ;;  %v1980_v7 = vld [vmem:[%s4860_s2 + $0x28] sm:$0xff]  ;;  %vm718_vm2 = vcmask 1045504   ;;  %s212_s14 = sand.u32 1, %s2664_s16   ;;  %s2367_s29 = sshll.u32 %s2672_s18, 12 }
  0x18   : > { %v2500_v8 = vpack.c.bf16 %v1978_v5, %v1977_v2  ;;  %v1981_v9 = vld [vmem:[%s4860_s2 + $0x30] sm:$0xff]  ;;  %v1982_v10 = vld [vmem:[%s4860_s2 + $0x38] sm:$0xff]  ;;  %v1983_v11 = vld [vmem:[%s4860_s2 + $0x40] sm:$0xff]  ;;  %s2794_s5 = scalar_select %p215_p11, %s2672_s18, 1  ;;  %v338_v12 = vshrl.u32 %v337_v3, 7  ;;  %v2504_v16 = vpack.c.bf16 %v1980_v7, %v1979_v6 }
  0x19   : > { %2497 = vmatprep.subr.bf16.mxu0 %v2496_v4  ;;  %2528 = vmatprep.subr.bf16.mxu1 %v2496_v4  ;;  %v1984_v13 = vld [vmem:[%s4860_s2 + $0x48] sm:$0xff]  ;;  %v1985_v14 = vld [vmem:[%s4860_s2 + $0x50] sm:$0xff]  ;;  %v1986_v15 = vld [vmem:[%s4860_s2 + $0x58] sm:$0xff]  ;;  %v2815_v22 = vpack.c.bf16 %v1982_v10, %v1981_v9  ;;  %s2359_s21 = sshll.u32 %s212_s14, 8  ;;  %s4803_s8 = scalar_lea.hbm %s4862_s4, %s2367_s29 }
  0x1a   : > { %2499 = vmatpush3.bf16.msra.mxu0 %v2496_v4  ;;  %2536 = vmatpush3.bf16.msra.mxu1 %v2496_v4  ;;  %v1987_v17 = vld [vmem:[%s4860_s2 + $0x60] sm:$0xff]  ;;  %v1988_v18 = vld [vmem:[%s4860_s2 + $0x68] sm:$0xff]  ;;  %v1989_v19 = vld [vmem:[%s4860_s2 + $0x70] sm:$0xff]  ;;  %s2544_s26 = smul.u32 432, %s2794_s5  ;;  %v339_v20 = vsub.s32 0, %v338_v12  ;;  %v375_v21 = vsub.s32 1, %v338_v12  ;;  %v2817_v23 = vpack.c.bf16 %v1984_v13, %v1983_v11  ;;  %v2819_v24 = vpack.c.bf16 %v1986_v15, %v1985_v14 }
  0x1b   : > { %2501 = vmatprep.subr.bf16.mxu0 %v2500_v8  ;;  %2529 = vmatprep.subr.bf16.mxu1 %v2500_v8  ;;  %v1990_v25 = vld [vmem:[%s4860_s2 + $0x78] sm:$0xff]  ;;  %v334_v26 = vld [vmem:[%s4859_s1] sm:$0x7]  ;;  %v335_v27 = vld [vmem:[%s4859_s1 + $0x4] sm:$0x7]  ;;  %v2830_v28 = vsub.s32 2, %v338_v12  ;;  %v2832_v29 = vpack.c.bf16 %v1988_v18, %v1987_v17 }
  0x1c   : > { %v2834_v30 = vpack.c.bf16 %v1990_v25, %v1989_v19  ;;  %s2839_s11 = scalar_lea.vmem %s4858_s0, %s2544_s26  ;;  %v336_v31 = vld [vmem:[%s4859_s1 + $0x8] sm:$0x7]  ;;  %v2844_v32 = vrot.slane %v334_v26, %v339_v20  ;;  %v2846_v33 = vrot.slane %v334_v26, %v375_v21  ;;  %v2854_v38 = vrot.slane %v335_v27, %v339_v20  ;;  %s4721_s26 = scalar_lea.vmem [#allocation2], %s2359_s21 }
  0x1d   : > { %v225_v34 = vld [vmem:[%s2839_s11] sm:$0xff]  ;;  %v226_v35 = vld [vmem:[%s2839_s11 + $0x8] sm:$0xff]  ;;  %v228_v36 = vld [vmem:[%s2839_s11 + $0x18] sm:$0xff]  ;;  %v2852_v37 = vrot.slane %v334_v26, %v2830_v28  ;;  %v2856_v39 = vrot.slane %v335_v27, %v375_v21  ;;  %v2859_v40 = vrot.slane %v335_v27, %v2830_v28  ;;  %v2871_v47 = vrot.slane %v336_v31, %v339_v20  ;;  %s2272_s30 = sshll.u32 %s4721_s26, 4  ;;  %s4812_s18 = scalar_lea.sflag [#allocation3], %s212_s14  ;;  %s4805_s30 = int_to_ptr.vmem [resolvable:$true] %s2272_s30 }
  0x1e   : > { %2503 = vmatpush3.bf16.msra.mxu0 %v2500_v8  ;;  %2537 = vmatpush3.bf16.msra.mxu1 %v2500_v8  ;;  %v229_v41 = vld [vmem:[%s2839_s11 + $0x20] sm:$0xff]  ;;  %v231_v42 = vld [vmem:[%s2839_s11 + $0x30] sm:$0xff]  ;;  %v232_v43 = vld [vmem:[%s2839_s11 + $0x38] sm:$0xff]  ;;  %v280_v44 = vsel %vm279_vm0, %v225_v34, 0.0  ;;  %v2866_v45 = vsel %vm279_vm0, %v226_v35, 0.0  ;;  %v2869_v46 = vsel %vm279_vm0, %v228_v36, 0.0  ;;  %v2882_v51 = vrot.slane %v336_v31, %v375_v21 }
  0x1f   : > { %2505 = vmatprep.subr.bf16.mxu0 %v2504_v16  ;;  %2530 = vmatprep.subr.bf16.mxu1 %v2504_v16  ;;  %v2874_v48 = vsel %vm279_vm0, %v229_v41, 0.0  ;;  %v2877_v49 = vsel %vm279_vm0, %v231_v42, 0.0  ;;  %v2880_v50 = vsel %vm279_vm0, %v232_v43, 0.0  ;;  %v377_v52 = vmul.f32 %v2846_v33, %v280_v44  ;;  %v249_v4 = vld [vmem:[%s2839_s11 + $0xc0] sm:$0xff]  ;;  %v250_v9 = vld [vmem:[%s2839_s11 + $0xc8] sm:$0xff]  ;;  %v252_v14 = vld [vmem:[%s2839_s11 + $0xd8] sm:$0xff] }
  0x20   : > { %v2887_v53 = vmul.f32 %v2846_v33, %v2866_v45  ;;  %v622_v54 = vmul.f32 %v2852_v37, %v280_v44  ;;  %v2892_v55 = vmul.f32 %v2852_v37, %v2866_v45  ;;  %v341_v56 = vmul.f32 %v2844_v32, %v280_v44  ;;  %v253_v15 = vld [vmem:[%s2839_s11 + $0xe0] sm:$0xff]  ;;  %v255_v19 = vld [vmem:[%s2839_s11 + $0xf0] sm:$0xff]  ;;  %s2602_s5 = scalar_lea.vmem %s4805_s30, 4096  ;;  %s2682_s9 = smov [#allocation2]  }
  0x21   : > { %v935_v57 = vmul.f32 %v2856_v39, %v2869_v46  ;;  %v2899_v58 = vmul.f32 %v2856_v39, %v2874_v48  ;;  %v1179_v59 = vmul.f32 %v2859_v40, %v2869_v46  ;;  %v474_v60 = vrot.slane %v377_v52, 1  ;;  %p2603_p12 = scmp.ne.s32.totalorder %s4805_s30, %s2602_s5  ;;  %s2606_s10 = sshll.u32 %s2682_s9, 4  ;;  %s2607_s10 = int_to_ptr.vmem [resolvable:$false] %s2606_s10 }
  0x22   : > { %2507 = vmatpush3.bf16.msra.mxu0 %v2504_v16  ;;  %2538 = vmatpush3.bf16.msra.mxu1 %v2504_v16  ;;  %v475_v61 = vrot.slane %v2887_v53, 1  ;;  %v719_v62 = vrot.slane %v622_v54, 2  ;;  %v720_v63 = vrot.slane %v2892_v55, 2  ;;  %v2910_v2 = vmul.f32 %v2859_v40, %v2874_v48  ;;  %p2609_p1 = scmp.lt.s32.totalorder %s4805_s30, %s2607_s10 }
  0x23   : > { %2509 = vmatprep.subr.bf16.mxu0 %v2815_v22  ;;  %2531 = vmatprep.subr.bf16.mxu1 %v2815_v22  ;;  %v1031_v0 = vrot.slane %v935_v57, 1  ;;  %v1032_v1 = vrot.slane %v2899_v58, 1  ;;  %v1275_v3 = vrot.slane %v1179_v59, 2  ;;  %v867_v7 = vmul.f32 %v2854_v38, %v2869_v46  ;;  %p2604_p13 = pnand %p2603_p12, %p2750_p4 }
  0x24   : > { %v476_v5 = vsel %vm473_vm1, %v474_v60, %v475_v61  ;;  %v721_v6 = vsel %vm718_vm2, %v719_v62, %v720_v63  ;;  %v1491_v8 = vmul.f32 %v2882_v51, %v2877_v49  ;;  %v1276_v11 = vrot.slane %v2910_v2, 2  ;;  %v227_v62 = vld [vmem:[%s2839_s11 + $0x10] sm:$0x3] }
  0x25   : > { %v586_v10 = vadd.f32 %v476_v5, %v341_v56  ;;  %v1423_v12 = vmul.f32 %v2871_v47, %v2877_v49  ;;  %v2929_v13 = vmul.f32 %v2882_v51, %v2880_v50  ;;  %v1033_v16 = vsel %vm473_vm1, %v1031_v0, %v1032_v1  ;;  %p2605_p0 = pneg %p2604_p13 }
  0x26   : > { %2511 = vmatpush3.bf16.msra.mxu0 %v2815_v22  ;;  %2539 = vmatpush3.bf16.msra.mxu1 %v2815_v22  ;;  %v1587_v17 = vrot.slane %v1491_v8, 1  ;;  %v2939_v18 = vrot.slane %v336_v31, %v2830_v28  ;;  %v2943_v20 = vsel %vm279_vm0, %v249_v4, 0.0  ;;  %v1277_v22 = vsel %vm718_vm2, %v1275_v3, %v1276_v11  ;;  %v256_v31 = vld [vmem:[%s2839_s11 + $0xf8] sm:$0xff] }
  0x27   : > { %2513 = vmatprep.subr.bf16.mxu0 %v2817_v23  ;;  %2532 = vmatprep.subr.bf16.mxu1 %v2817_v23  ;;  %v831_v21 = vadd.f32 %v721_v6, %v586_v10  ;;  %v1588_v25 = vrot.slane %v2929_v13, 1  ;;  %v2952_v26 = vsel %vm279_vm0, %v250_v9, 0.0  ;;  %v2962_v34 = vsel %vm279_vm0, %v252_v14, 0.0  ;;  %v230_v10 = vld [vmem:[%s2839_s11 + $0x28] sm:$0x3] }
  0x28   : > { %v1735_v27 = vmul.f32 %v2939_v18, %v2877_v49  ;;  %v2958_v28 = vmul.f32 %v2939_v18, %v2880_v50  ;;  %v2965_v35 = vsel %vm279_vm0, %v253_v15, 0.0  ;;  %v2971_v42 = vsel %vm279_vm0, %v255_v19, 0.0 }
  0x29   : > { %v899_v36 = vadd.f32 %v867_v7, %v831_v21  ;;  %v1589_v41 = vsel %vm473_vm1, %v1587_v17, %v1588_v25  ;;  %v357_v43 = vmul.f32 %v2844_v32, %v2943_v20  ;;  %v401_v54 = vmul.f32 %v2846_v33, %v2943_v20 }
  0x2a   : > { %2515 = vmatpush3.bf16.msra.mxu0 %v2817_v23  ;;  %2540 = vmatpush3.bf16.msra.mxu1 %v2817_v23  ;;  %v1831_v44 = vrot.slane %v1735_v27, 2  ;;  %v1832_v52 = vrot.slane %v2958_v28, 2  ;;  %v2982_v56 = vmul.f32 %v2846_v33, %v2952_v26  ;;  %v2987_v59 = vsel %vm279_vm0, %v256_v31, 0.0 }
  0x2b   : > { %2517 = vmatprep.subr.bf16.mxu0 %v2819_v24  ;;  %2533 = vmatprep.subr.bf16.mxu1 %v2819_v24  ;;  %v1143_v57 = vadd.f32 %v1033_v16, %v899_v36  ;;  %v646_v23 = vmul.f32 %v2852_v37, %v2943_v20  ;;  %v2993_v60 = vmul.f32 %v2852_v37, %v2952_v26  ;;  %v514_v3 = vrot.slane %v401_v54, 1 }
  0x2c   : > { %v1833_v0 = vsel %vm718_vm2, %v1831_v44, %v1832_v52  ;;  %v4868_v4 = vrot.slane %v2982_v56, 1  ;;  %v883_v5 = vmul.f32 %v2854_v38, %v2962_v34  ;;  %v959_v9 = vmul.f32 %v2856_v39, %v2962_v34 }
  0x2d   : > { %v1387_v6 = vadd.f32 %v1277_v22, %v1143_v57  ;;  %v759_v7 = vrot.slane %v646_v23, 2  ;;  %v4867_v8 = vrot.slane %v2993_v60, 2  ;;  %v3013_v15 = vmul.f32 %v2856_v39, %v2965_v35 }
  0x2e   : > { %2519 = vmatpush3.bf16.msra.mxu0 %v2819_v24  ;;  %2541 = vmatpush3.bf16.msra.mxu1 %v2819_v24  ;;  %v516_v14 = vsel %vm473_vm1, %v514_v3, %v4868_v4  ;;  %v1203_v16 = vmul.f32 %v2859_v40, %v2962_v34  ;;  %v282_v17 = vsel %vm279_vm0, %v227_v62, 0.0  ;;  %v1071_v22 = vrot.slane %v959_v9, 1 }
  0x2f   : > { %2521 = vmatprep.subr.bf16.mxu0 %v2832_v29  ;;  %2534 = vmatprep.subr.bf16.mxu1 %v2832_v29  ;;  %v1455_v19 = vadd.f32 %v1423_v12, %v1387_v6  ;;  %v602_v21 = vadd.f32 %v516_v14, %v357_v43  ;;  %v761_v24 = vsel %vm718_vm2, %v759_v7, %v4867_v8  ;;  %v4866_v27 = vrot.slane %v3013_v15, 1  ;;  %v257_v8 = vld [vmem:[%s2839_s11 + $0x100] sm:$0x3] }
  0x30   : > { %v3026_v31 = vmul.f32 %v2859_v40, %v2965_v35  ;;  %v1315_v36 = vrot.slane %v1203_v16, 2  ;;  %v3029_v44 = vsel %vm279_vm0, %v230_v10, 0.0  ;;  %v1515_v12 = vmul.f32 %v2882_v51, %v2971_v42  ;;  %v233_v10 = vld [vmem:[%s2839_s11 + $0x40] sm:$0x3] }
  0x31   : > { %v1699_v54 = vadd.f32 %v1589_v41, %v1455_v19  ;;  %v847_v57 = vadd.f32 %v761_v24, %v602_v21  ;;  %v3035_v43 = vmul.f32 %v2882_v51, %v2987_v59  ;;  %v1073_v23 = vsel %vm473_vm1, %v1071_v22, %v4866_v27 }
  0x32   : > { %2523 = vmatpush3.bf16.msra.mxu0 %v2832_v29  ;;  %2542 = vmatpush3.bf16.msra.mxu1 %v2832_v29  ;;  %v4865_v62 = vrot.slane %v3026_v31, 2  ;;  %v1759_v41 = vmul.f32 %v2939_v18, %v2971_v42  ;;  %v3047_v3 = vmul.f32 %v2939_v18, %v2987_v59  ;;  %v1627_v7 = vrot.slane %v1515_v12, 1 }
  0x33   : > { %2525 = vmatprep.subr.bf16.mxu0 %v2834_v30  ;;  %2535 = vmatprep.subr.bf16.mxu1 %v2834_v30  ;;  %v1943_v6 = vadd.f32 %v1833_v0, %v1699_v54  ;;  %v915_v29 = vadd.f32 %v883_v5, %v847_v57  ;;  %v4864_v9 = vrot.slane %v3035_v43, 1  ;;  %v1439_v16 = vmul.f32 %v2871_v47, %v2971_v42  ;;  %v251_v54 = vld [vmem:[%s2839_s11 + $0xd0] sm:$0x3] }
  0x34   : > { %v1317_v14 = vsel %vm718_vm2, %v1315_v36, %v4865_v62  ;;  %v1871_v19 = vrot.slane %v1759_v41, 2  ;;  %v4863_v21 = vrot.slane %v3047_v3, 2  ;;  %v342_v5 = vmul.f32 %v2844_v32, %v2866_v45 }
  0x35   : > { %2448 = vmatprep.mubr.f32.mxu0 %v1943_v6  ;;  %v1159_v24 = vadd.f32 %v1073_v23, %v915_v29  ;;  %v1629_v0 = vsel %vm473_vm1, %v1627_v7, %v4864_v9  ;;  %v379_v22 = vmul.f32 %v2846_v33, %v282_v17  ;;  %v3072_v57 = vsel %vm279_vm0, %v233_v10, 0.0 }
  0x36   : > { %2527 = vmatpush3.bf16.msra.mxu0 %v2834_v30  ;;  %2543 = vmatpush3.bf16.msra.mxu1 %v2834_v30  ;;  %v1873_v36 = vsel %vm718_vm2, %v1871_v19, %v4863_v21  ;;  %v624_v12 = vmul.f32 %v2852_v37, %v282_v17  ;;  %v868_v45 = vmul.f32 %v2854_v38, %v2874_v48  ;;  %v3086_v17 = vsel %vm279_vm0, %v251_v54, 0.0  ;;  %v254_v21 = vld [vmem:[%s2839_s11 + $0xe8] sm:$0x3] }
  0x37   : > { %v1403_v23 = vadd.f32 %v1317_v14, %v1159_v24  ;;  %v477_v41 = vrot.slane %v379_v22, 1  ;;  %v937_v6 = vmul.f32 %v2856_v39, %v3029_v44  ;;  %v1181_v30 = vmul.f32 %v2859_v40, %v3029_v44 }
  0x38   : > { %v722_v29 = vrot.slane %v624_v12, 2  ;;  %v1493_v7 = vmul.f32 %v2882_v51, %v3072_v57  ;;  %v1737_v10 = vmul.f32 %v2939_v18, %v3072_v57  ;;  %v3111_v58 = vsel %vm279_vm0, %v254_v21, 0.0  ;;  %v234_v21 = vld [vmem:[%s2839_s11 + $0x48] sm:$0xff] }
  0x39   : > { %v1471_v19 = vadd.f32 %v1439_v16, %v1403_v23  ;;  %v478_v14 = vsel %vm473_vm1, %v475_v61, %v477_v41  ;;  %v1034_v24 = vrot.slane %v937_v6, 1  ;;  %v1278_v22 = vrot.slane %v1181_v30, 2  ;;  %4923 = vst [vmem:[#allocation5_spill] sm:$0xff] %v3111_v58  ;;  %v235_v23 = vld [vmem:[%s2839_s11 + $0x50] sm:$0xff] }
  0x3a   : > { %v587_v9 = vadd.f32 %v478_v14, %v342_v5  ;;  %v723_v12 = vsel %vm718_vm2, %v720_v63, %v722_v29  ;;  %v1590_v62 = vrot.slane %v1493_v7, 1  ;;  %v1834_v27 = vrot.slane %v1737_v10, 2 }
  0x3b   : > { %v1715_v4 = vadd.f32 %v1629_v0, %v1471_v19  ;;  %v1035_v16 = vsel %vm473_vm1, %v1032_v1, %v1034_v24  ;;  %v1279_v53 = vsel %vm718_vm2, %v1276_v11, %v1278_v22  ;;  %v1424_v61 = vmul.f32 %v2871_v47, %v2880_v50 }
  0x3c   : > { %v832_v5 = vadd.f32 %v723_v12, %v587_v9  ;;  %v1591_v55 = vsel %vm473_vm1, %v1588_v25, %v1590_v62  ;;  %v1835_v63 = vsel %vm718_vm2, %v1832_v52, %v1834_v27  ;;  %v3114_v2 = vsel %vm279_vm0, %v257_v8, 0.0 }
  0x3d   : > { %v1959_v1 = vadd.f32 %v1873_v36, %v1715_v4  ;;  %v403_v11 = vmul.f32 %v2846_v33, %v3086_v17  ;;  %v648_v13 = vmul.f32 %v2852_v37, %v3086_v17  ;;  %v358_v28 = vmul.f32 %v2844_v32, %v2952_v26 }
  0x3e   : > { %v900_v25 = vadd.f32 %v868_v45, %v832_v5  ;;  %v961_v52 = vmul.f32 %v2856_v39, %v3111_v58  ;;  %v1205_v4 = vmul.f32 %v2859_v40, %v3111_v58  ;;  %v884_v62 = vmul.f32 %v2854_v38, %v2965_v35 }
  0x3f   : > { %2472 = vmatprep.mubr.f32.mxu1 %v1959_v1  ;;  %v517_v8 = vrot.slane %v403_v11, 1  ;;  %v762_v27 = vrot.slane %v648_v13, 2  ;;  %v1517_v9 = vmul.f32 %v2882_v51, %v3114_v2  ;;  %v1761_v45 = vmul.f32 %v2939_v18, %v3114_v2 }
  0x40   : > { %v1144_v0 = vadd.f32 %v1035_v16, %v900_v25  ;;  %v1074_v54 = vrot.slane %v961_v52, 1  ;;  %v1318_v36 = vrot.slane %v1205_v4, 2  ;;  %v4924_v41 = vrot.slane %v2982_v56, 1 }
  0x41   : > { %v4925_v30 = vrot.slane %v2993_v60, 2  ;;  %v1440_v7 = vmul.f32 %v2871_v47, %v2987_v59  ;;  %v1630_v10 = vrot.slane %v1517_v9, 1  ;;  %v4926_v24 = vrot.slane %v3013_v15, 1 }
  0x42   : > { %v518_v6 = vsel %vm473_vm1, %v4924_v41, %v517_v8  ;;  %v1388_v19 = vadd.f32 %v1279_v53, %v1144_v0  ;;  %v3146_v12 = vsel %vm279_vm0, %v234_v21, 0.0  ;;  %v4927_v56 = vrot.slane %v3026_v31, 2 }
  0x43   : > { %v763_v29 = vsel %vm718_vm2, %v4925_v30, %v762_v27  ;;  %v603_v14 = vadd.f32 %v518_v6, %v358_v28  ;;  %v1075_v22 = vsel %vm473_vm1, %v4926_v24, %v1074_v54  ;;  %v4928_v60 = vrot.slane %v3035_v43, 1 }
  0x44   : > { %v1319_v16 = vsel %vm718_vm2, %v4927_v56, %v1318_v36  ;;  %v1874_v1 = vrot.slane %v1761_v45, 2  ;;  %v3155_v11 = vsel %vm279_vm0, %v235_v23, 0.0  ;;  %v1456_v53 = vadd.f32 %v1424_v61, %v1388_v19 }
  0x45   : > { %v1631_v5 = vsel %vm473_vm1, %v4928_v60, %v1630_v10  ;;  %v848_v13 = vadd.f32 %v763_v29, %v603_v14  ;;  %v380_v15 = vmul.f32 %v2846_v33, %v2869_v46  ;;  %v3161_v25 = vmul.f32 %v2846_v33, %v2874_v48 }
  0x46   : > { %v343_v31 = vmul.f32 %v2844_v32, %v2869_v46  ;;  %v625_v43 = vmul.f32 %v2852_v37, %v2869_v46  ;;  %v3169_v28 = vmul.f32 %v2852_v37, %v2874_v48  ;;  %v869_v61 = vmul.f32 %v2854_v38, %v2877_v49 }
  0x47   : > { %v1700_v52 = vadd.f32 %v1591_v55, %v1456_v53  ;;  %v916_v4 = vadd.f32 %v884_v62, %v848_v13  ;;  %v479_v8 = vrot.slane %v380_v15, 1  ;;  %v480_v27 = vrot.slane %v3161_v25, 1  ;;  %v258_v53 = vld [vmem:[%s2839_s11 + $0x108] sm:$0xff] }
  0x48   : > { %v724_v9 = vrot.slane %v625_v43, 2  ;;  %v725_v21 = vrot.slane %v3169_v28, 2  ;;  %v938_v0 = vmul.f32 %v2856_v39, %v2877_v49  ;;  %v3179_v46 = vmul.f32 %v2856_v39, %v2880_v50 }
  0x49   : > { %v1944_v54 = vadd.f32 %v1835_v63, %v1700_v52  ;;  %v1160_v36 = vadd.f32 %v1075_v22, %v916_v4  ;;  %v481_v55 = vsel %vm473_vm1, %v479_v8, %v480_v27  ;;  %v1182_v62 = vmul.f32 %v2859_v40, %v2877_v49 }
  0x4a   : > { %v588_v45 = vadd.f32 %v481_v55, %v343_v31  ;;  %v726_v23 = vsel %vm718_vm2, %v724_v9, %v725_v21  ;;  %v1036_v41 = vrot.slane %v938_v0, 1  ;;  %v1037_v6 = vrot.slane %v3179_v46, 1 }
  0x4b   : > { %2449 = vmatmul.mubr.f32.vlgmr.msra.gmra.mrb[0].mxu0 %v1944_v54  ;;  %v1404_v30 = vadd.f32 %v1319_v16, %v1160_v36  ;;  %v4929_v63 = vrot.slane %v3047_v3, 2  ;;  %v3195_v10 = vmul.f32 %v2859_v40, %v2880_v50  ;;  %v1280_v19 = vrot.slane %v1182_v62, 2 }
  0x4c   : > { %v833_v14 = vadd.f32 %v726_v23, %v588_v45  ;;  %v1038_v24 = vsel %vm473_vm1, %v1036_v41, %v1037_v6  ;;  %v1494_v22 = vmul.f32 %v2882_v51, %v3146_v12  ;;  %v3204_v56 = vmul.f32 %v2882_v51, %v3155_v11 }
  0x4d   : > { %v1875_v29 = vsel %vm718_vm2, %v4929_v63, %v1874_v1  ;;  %v1472_v3 = vadd.f32 %v1440_v7, %v1404_v30  ;;  %v4875_v16 = vrot.slane %v3195_v10, 2  ;;  %v1738_v60 = vmul.f32 %v2939_v18, %v3146_v12 }
  0x4e   : > { %v3211_v1 = vmul.f32 %v2939_v18, %v3155_v11  ;;  %v901_v13 = vadd.f32 %v869_v61, %v833_v14  ;;  %v1425_v15 = vmul.f32 %v2871_v47, %v3146_v12  ;;  %v1592_v31 = vrot.slane %v1494_v22, 1  ;;  %v259_v22 = vld [vmem:[%s2839_s11 + $0x110] sm:$0xff] }
  0x4f   : > { %v4874_v43 = vrot.slane %v3204_v56, 1  ;;  %v1716_v52 = vadd.f32 %v1631_v5, %v1472_v3  ;;  %v1282_v7 = vsel %vm718_vm2, %v1280_v19, %v4875_v16  ;;  %v1836_v4 = vrot.slane %v1738_v60, 2 }
  0x50   : > { %v4873_v8 = vrot.slane %v3211_v1, 2  ;;  %v1145_v9 = vadd.f32 %v1038_v24, %v901_v13  ;;  %v3225_v61 = vsel %vm279_vm0, %v258_v53, 0.0  ;;  %v359_v54 = vmul.f32 %v2844_v32, %v2962_v34 }
  0x51   : > { %v1594_v0 = vsel %vm473_vm1, %v1592_v31, %v4874_v43  ;;  %v1960_v5 = vadd.f32 %v1875_v29, %v1716_v52  ;;  %v404_v55 = vmul.f32 %v2846_v33, %v2962_v34  ;;  %v3236_v62 = vmul.f32 %v2846_v33, %v2965_v35 }
  0x52   : > { %v1838_v36 = vsel %vm718_vm2, %v1836_v4, %v4873_v8  ;;  %v1389_v45 = vadd.f32 %v1282_v7, %v1145_v9  ;;  %v649_v23 = vmul.f32 %v2852_v37, %v2962_v34  ;;  %v3242_v41 = vmul.f32 %v2852_v37, %v2965_v35 }
  0x53   : > { %v885_v30 = vmul.f32 %v2854_v38, %v2971_v42  ;;  %2473 = vmatmul.mubr.f32.vlgmr.msra.gmra.mrb[0].mxu1 %v1960_v5  ;;  %v519_v63 = vrot.slane %v404_v55, 1  ;;  %v4872_v29 = vrot.slane %v3236_v62, 1  ;;  %v962_v19 = vmul.f32 %v2856_v39, %v2971_v42 }
  0x54   : > { %v3251_v14 = vmul.f32 %v2856_v39, %v2987_v59  ;;  %v1457_v24 = vadd.f32 %v1425_v15, %v1389_v45  ;;  %v764_v3 = vrot.slane %v649_v23, 2  ;;  %v4871_v60 = vrot.slane %v3242_v41, 2 }
  0x55   : > { %v1206_v53 = vmul.f32 %v2859_v40, %v2971_v42  ;;  %v521_v13 = vsel %vm473_vm1, %v519_v63, %v4872_v29  ;;  %v1076_v31 = vrot.slane %v962_v19, 1  ;;  %v3263_v7 = vmul.f32 %v2859_v40, %v2987_v59  ;;  %v236_v19 = vld [vmem:[%s2839_s11 + $0x58] sm:$0x3] }
  0x56   : > { %v4869_v52 = vrot.slane %v3251_v14, 1  ;;  %v1701_v15 = vadd.f32 %v1594_v0, %v1457_v24  ;;  %v604_v4 = vadd.f32 %v521_v13, %v359_v54  ;;  %v766_v9 = vsel %vm718_vm2, %v764_v3, %v4871_v60 }
  0x57   : > { %v1320_v5 = vrot.slane %v1206_v53, 2  ;;  %v3269_v55 = vsel %vm279_vm0, %v259_v22, 0.0  ;;  %v4870_v23 = vrot.slane %v3263_v7, 2  ;;  %v1518_v63 = vmul.f32 %v2882_v51, %v3225_v61 }
  0x58   : > { %v1078_v45 = vsel %vm473_vm1, %v1076_v31, %v4869_v52  ;;  %v1945_v0 = vadd.f32 %v1838_v36, %v1701_v15  ;;  %v849_v54 = vadd.f32 %v766_v9, %v604_v4  ;;  %v3280_v24 = vmul.f32 %v2882_v51, %v3269_v55 }
  0x59   : > { %v1762_v22 = vmul.f32 %v2939_v18, %v3225_v61  ;;  %v1322_v3 = vsel %vm718_vm2, %v1320_v5, %v4870_v23  ;;  %v1441_v53 = vmul.f32 %v2871_v47, %v3225_v61  ;;  %v1632_v13 = vrot.slane %v1518_v63, 1 }
  0x5a   : > { %v3291_v31 = vmul.f32 %v2939_v18, %v3269_v55  ;;  %2451 = vmatprep.mubr.f32.mxu0 %v1945_v0  ;;  %v917_v36 = vadd.f32 %v885_v30, %v849_v54  ;;  %v1633_v15 = vrot.slane %v3280_v24, 1  ;;  %v3295_v9 = vsel %vm279_vm0, %v236_v19, 0.0 }
  0x5b   : > { %v1876_v4 = vrot.slane %v1762_v22, 2  ;;  %v344_v5 = vmul.f32 %v2844_v32, %v2874_v48  ;;  %v382_v63 = vmul.f32 %v2846_v33, %v3029_v44  ;;  %v627_v23 = vmul.f32 %v2852_v37, %v3029_v44 }
  0x5c   : > { %v1877_v52 = vrot.slane %v3291_v31, 2  ;;  %v1161_v0 = vadd.f32 %v1078_v45, %v917_v36  ;;  %v870_v30 = vmul.f32 %v2854_v38, %v2880_v50  ;;  %v940_v54 = vmul.f32 %v2856_v39, %v3072_v57  ;;  %v260_v45 = vld [vmem:[%s2839_s11 + $0x118] sm:$0x3] }
  0x5d   : > { %v1184_v19 = vmul.f32 %v2859_v40, %v3072_v57  ;;  %v1634_v48 = vsel %vm473_vm1, %v1632_v13, %v1633_v15  ;;  %v482_v60 = vrot.slane %v382_v63, 1  ;;  %v727_v44 = vrot.slane %v627_v23, 2 }
  0x5e   : > { %v1878_v22 = vsel %vm718_vm2, %v1876_v4, %v1877_v52  ;;  %v1405_v36 = vadd.f32 %v1322_v3, %v1161_v0  ;;  %v1039_v29 = vrot.slane %v940_v54, 1  ;;  %v1496_v43 = vmul.f32 %v2882_v51, %v3295_v9 }
  0x5f   : > { %v1283_v8 = vrot.slane %v1184_v19, 2  ;;  %v483_v16 = vsel %vm473_vm1, %v480_v27, %v482_v60  ;;  %v728_v13 = vsel %vm718_vm2, %v725_v21, %v727_v44  ;;  %v1426_v4 = vmul.f32 %v2871_v47, %v3155_v11 }
  0x60   : > { %v1740_v23 = vmul.f32 %v2939_v18, %v3295_v9  ;;  %v1473_v3 = vadd.f32 %v1441_v53, %v1405_v36  ;;  %v589_v63 = vadd.f32 %v483_v16, %v344_v5  ;;  %v1040_v0 = vsel %vm473_vm1, %v1037_v6, %v1039_v29 }
  0x61   : > { %v3333_v25 = vsel %vm279_vm0, %v260_v45, 0.0  ;;  %v4930_v27 = vrot.slane %v3195_v10, 2  ;;  %v1595_v21 = vrot.slane %v1496_v43, 1  ;;  %v406_v54 = vmul.f32 %v2846_v33, %v3111_v58 }
  0x62   : > { %v1839_v60 = vrot.slane %v1740_v23, 2  ;;  %v1717_v19 = vadd.f32 %v1634_v48, %v1473_v3  ;;  %v834_v53 = vadd.f32 %v728_v13, %v589_v63  ;;  %v360_v46 = vmul.f32 %v2844_v32, %v2965_v35 }
  0x63   : > { %v1284_v28 = vsel %vm718_vm2, %v4930_v27, %v1283_v8  ;;  %v651_v6 = vmul.f32 %v2852_v37, %v3111_v58  ;;  %v4931_v16 = vrot.slane %v3204_v56, 1  ;;  %v522_v29 = vrot.slane %v406_v54, 1  ;;  %v237_v27 = vld [vmem:[%s2839_s11 + $0x60] sm:$0xff] }
  0x64   : > { %v886_v43 = vmul.f32 %v2854_v38, %v2987_v59  ;;  %v964_v8 = vmul.f32 %v2856_v39, %v3114_v2  ;;  %v1961_v5 = vadd.f32 %v1878_v22, %v1717_v19  ;;  %v902_v48 = vadd.f32 %v870_v30, %v834_v53 }
  0x65   : > { %v1596_v10 = vsel %vm473_vm1, %v4931_v16, %v1595_v21  ;;  %v767_v44 = vrot.slane %v651_v6, 2  ;;  %v1208_v45 = vmul.f32 %v2859_v40, %v3114_v2  ;;  %v4932_v36 = vrot.slane %v3211_v1, 2  ;;  %v238_v1 = vld [vmem:[%s2839_s11 + $0x68] sm:$0xff] }
  0x66   : > { %v4933_v13 = vrot.slane %v3236_v62, 1  ;;  %v1079_v3 = vrot.slane %v964_v8, 1  ;;  %v1520_v63 = vmul.f32 %v2882_v51, %v3333_v25  ;;  %2475 = vmatprep.mubr.f32.mxu1 %v1961_v5  ;;  %v1146_v22 = vadd.f32 %v1040_v0, %v902_v48 }
  0x67   : > { %v1840_v56 = vsel %vm718_vm2, %v4932_v36, %v1839_v60  ;;  %v4934_v21 = vrot.slane %v3242_v41, 2  ;;  %v1323_v19 = vrot.slane %v1208_v45, 2  ;;  %v4935_v60 = vrot.slane %v3251_v14, 1 }
  0x68   : > { %v523_v23 = vsel %vm473_vm1, %v4933_v13, %v522_v29  ;;  %v1442_v53 = vmul.f32 %v2871_v47, %v3269_v55  ;;  %v1635_v6 = vrot.slane %v1520_v63, 1  ;;  %v1764_v16 = vmul.f32 %v2939_v18, %v3333_v25 }
  0x69   : > { %v605_v30 = vadd.f32 %v523_v23, %v360_v46  ;;  %v768_v54 = vsel %vm718_vm2, %v4934_v21, %v767_v44  ;;  %v1080_v62 = vsel %vm473_vm1, %v4935_v60, %v1079_v3  ;;  %v1390_v29 = vadd.f32 %v1284_v28, %v1146_v22 }
  0x6a   : > { %v4936_v46 = vrot.slane %v3263_v7, 2  ;;  %v3377_v8 = vsel %vm279_vm0, %v237_v27, 0.0  ;;  %v1636_v14 = vsel %vm473_vm1, %v1633_v15, %v1635_v6  ;;  %v1879_v5 = vrot.slane %v1764_v16, 2 }
  0x6b   : > { %v850_v0 = vadd.f32 %v768_v54, %v605_v30  ;;  %v3383_v48 = vsel %vm279_vm0, %v238_v1, 0.0  ;;  %v383_v44 = vmul.f32 %v2846_v33, %v2877_v49  ;;  %v1458_v28 = vadd.f32 %v1426_v4, %v1390_v29 }
  0x6c   : > { %v1324_v41 = vsel %vm718_vm2, %v4936_v46, %v1323_v19  ;;  %v3389_v7 = vmul.f32 %v2846_v33, %v2880_v50  ;;  %v628_v36 = vmul.f32 %v2852_v37, %v2877_v49  ;;  %v345_v24 = vmul.f32 %v2844_v32, %v2877_v49 }
  0x6d   : > { %v918_v45 = vadd.f32 %v886_v43, %v850_v0  ;;  %v484_v15 = vrot.slane %v383_v44, 1  ;;  %v3397_v13 = vmul.f32 %v2852_v37, %v2880_v50  ;;  %v871_v23 = vmul.f32 %v2854_v38, %v3146_v12 }
  0x6e   : > { %v1702_v4 = vadd.f32 %v1596_v10, %v1458_v28  ;;  %v485_v3 = vrot.slane %v3389_v7, 1  ;;  %v729_v63 = vrot.slane %v628_v36, 2  ;;  %v941_v22 = vmul.f32 %v2856_v39, %v3146_v12  ;;  %v262_v36 = vld [vmem:[%s2839_s11 + $0x128] sm:$0xff] }
  0x6f   : > { %v1162_v43 = vadd.f32 %v1080_v62, %v918_v45  ;;  %v730_v27 = vrot.slane %v3397_v13, 2  ;;  %v3407_v49 = vmul.f32 %v2856_v39, %v3155_v11  ;;  %v1185_v30 = vmul.f32 %v2859_v40, %v3146_v12  ;;  %v261_v45 = vld [vmem:[%s2839_s11 + $0x120] sm:$0xff] }
  0x70   : > { %v1946_v21 = vadd.f32 %v1840_v56, %v1702_v4  ;;  %v486_v10 = vsel %vm473_vm1, %v484_v15, %v485_v3  ;;  %v3416_v19 = vmul.f32 %v2859_v40, %v3155_v11  ;;  %v1041_v62 = vrot.slane %v941_v22, 1 }
  0x71   : > { %v1406_v54 = vadd.f32 %v1324_v41, %v1162_v43  ;;  %v590_v1 = vadd.f32 %v486_v10, %v345_v24  ;;  %v731_v60 = vsel %vm718_vm2, %v729_v63, %v730_v27  ;;  %v4881_v6 = vrot.slane %v3407_v49, 1 }
  0x72   : > { %2452 = vmatmul.mubr.f32.gmra.mrb[2].mxu0 %v1946_v21  ;;  %v1880_v16 = vsel %vm718_vm2, %v1877_v52, %v1879_v5  ;;  %v1285_v29 = vrot.slane %v1185_v30, 2  ;;  %v4880_v0 = vrot.slane %v3416_v19, 2  ;;  %v1427_v41 = vmul.f32 %v2871_v47, %v3377_v8 }
  0x73   : > { %v1474_v56 = vadd.f32 %v1442_v53, %v1406_v54  ;;  %v835_v46 = vadd.f32 %v731_v60, %v590_v1  ;;  %v1497_v44 = vmul.f32 %v2882_v51, %v3377_v8  ;;  %v3432_v28 = vmul.f32 %v2882_v51, %v3383_v48 }
  0x74   : > { %v1043_v52 = vsel %vm473_vm1, %v1041_v62, %v4881_v6  ;;  %v1741_v31 = vmul.f32 %v2939_v18, %v3377_v8  ;;  %v3442_v5 = vmul.f32 %v2939_v18, %v3383_v48  ;;  %v1287_v15 = vsel %vm718_vm2, %v1285_v29, %v4880_v0 }
  0x75   : > { %v1718_v53 = vadd.f32 %v1636_v14, %v1474_v56  ;;  %v903_v24 = vadd.f32 %v871_v23, %v835_v46  ;;  %v1597_v4 = vrot.slane %v1497_v44, 1  ;;  %v4879_v14 = vrot.slane %v3432_v28, 1 }
  0x76   : > { %v1841_v63 = vrot.slane %v1741_v31, 2  ;;  %v4878_v22 = vrot.slane %v3442_v5, 2  ;;  %v3451_v30 = vsel %vm279_vm0, %v261_v45, 0.0  ;;  %v3457_v23 = vsel %vm279_vm0, %v262_v36, 0.0 }
  0x77   : > { %v1962_v43 = vadd.f32 %v1880_v16, %v1718_v53  ;;  %v1147_v21 = vadd.f32 %v1043_v52, %v903_v24  ;;  %v1599_v54 = vsel %vm473_vm1, %v1597_v4, %v4879_v14  ;;  %v407_v10 = vmul.f32 %v2846_v33, %v2971_v42 }
  0x78   : > { %v361_v1 = vmul.f32 %v2844_v32, %v2971_v42  ;;  %v3465_v60 = vmul.f32 %v2846_v33, %v2987_v59  ;;  %v652_v62 = vmul.f32 %v2852_v37, %v2971_v42  ;;  %v3471_v56 = vmul.f32 %v2852_v37, %v2987_v59 }
  0x79   : > { %2476 = vmatmul.mubr.f32.gmra.mrb[2].mxu1 %v1962_v43  ;;  %v1391_v16 = vadd.f32 %v1287_v15, %v1147_v21  ;;  %v1843_v29 = vsel %vm718_vm2, %v1841_v63, %v4878_v22  ;;  %v524_v46 = vrot.slane %v407_v10, 1  ;;  %v965_v44 = vmul.f32 %v2856_v39, %v3225_v61 }
  0x7a   : > { %v4876_v45 = vrot.slane %v3465_v60, 1  ;;  %v769_v53 = vrot.slane %v652_v62, 2  ;;  %v4877_v52 = vrot.slane %v3471_v56, 2  ;;  %v3482_v42 = vmul.f32 %v2856_v39, %v3269_v55 }
  0x7b   : > { %v1459_v31 = vadd.f32 %v1427_v41, %v1391_v16  ;;  %v1081_v36 = vrot.slane %v965_v44, 1  ;;  %v1209_v24 = vmul.f32 %v2859_v40, %v3225_v61  ;;  %v3488_v15 = vmul.f32 %v2859_v40, %v3269_v55 }
  0x7c   : > { %v526_v4 = vsel %vm473_vm1, %v524_v46, %v4876_v45  ;;  %v771_v43 = vsel %vm718_vm2, %v769_v53, %v4877_v52  ;;  %v887_v41 = vmul.f32 %v2854_v38, %v3225_v61  ;;  %v4884_v63 = vrot.slane %v3482_v42, 1  ;;  %v239_v52 = vld [vmem:[%s2839_s11 + $0x70] sm:$0x3] }
  0x7d   : > { %v1703_v21 = vadd.f32 %v1599_v54, %v1459_v31  ;;  %v606_v10 = vadd.f32 %v526_v4, %v361_v1  ;;  %v1325_v62 = vrot.slane %v1209_v24, 2  ;;  %v4883_v16 = vrot.slane %v3488_v15, 2 }
  0x7e   : > { %v1443_v44 = vmul.f32 %v2871_v47, %v3451_v30  ;;  %v1521_v46 = vmul.f32 %v2882_v51, %v3451_v30  ;;  %v3506_v45 = vmul.f32 %v2882_v51, %v3457_v23  ;;  %v1765_v53 = vmul.f32 %v2939_v18, %v3451_v30 }
  0x7f   : > { %v1947_v22 = vadd.f32 %v1843_v29, %v1703_v21  ;;  %v851_v54 = vadd.f32 %v771_v43, %v606_v10  ;;  %v1083_v1 = vsel %vm473_vm1, %v1081_v36, %v4884_v63  ;;  %v3516_v31 = vmul.f32 %v2939_v18, %v3457_v23 }
  0x80   : > { %v1327_v24 = vsel %vm718_vm2, %v1325_v62, %v4883_v16  ;;  %v1637_v4 = vrot.slane %v1521_v46, 1  ;;  %v4882_v14 = vrot.slane %v3506_v45, 1  ;;  %v1881_v0 = vrot.slane %v1765_v53, 2  ;;  %v263_v16 = vld [vmem:[%s2839_s11 + $0x130] sm:$0x3] }
  0x81   : > { %2454 = vmatprep.mubr.f32.mxu0 %v1947_v22  ;;  %v919_v6 = vadd.f32 %v887_v41, %v851_v54  ;;  %v4885_v29 = vrot.slane %v3516_v31, 2  ;;  %v3524_v43 = vsel %vm279_vm0, %v239_v52, 0.0  ;;  %v385_v36 = vmul.f32 %v2846_v33, %v3072_v57 }
  0x82   : > { %v1639_v21 = vsel %vm473_vm1, %v1637_v4, %v4882_v14  ;;  %v346_v10 = vmul.f32 %v2844_v32, %v2880_v50  ;;  %v630_v22 = vmul.f32 %v2852_v37, %v3072_v57  ;;  %v943_v41 = vmul.f32 %v2856_v39, %v3295_v9 }
  0x83   : > { %v1163_v62 = vadd.f32 %v1083_v1, %v919_v6  ;;  %v487_v52 = vrot.slane %v385_v36, 1  ;;  %v872_v46 = vmul.f32 %v2854_v38, %v3155_v11  ;;  %v1187_v53 = vmul.f32 %v2859_v40, %v3295_v9 }
  0x84   : > { %v1883_v54 = vsel %vm718_vm2, %v1881_v0, %v4885_v29  ;;  %v732_v4 = vrot.slane %v630_v22, 2  ;;  %v1044_v50 = vrot.slane %v943_v41, 1  ;;  %v1499_v57 = vmul.f32 %v2882_v51, %v3524_v43 }
  0x85   : > { %v1407_v14 = vadd.f32 %v1327_v24, %v1163_v62  ;;  %v488_v6 = vsel %vm473_vm1, %v485_v3, %v487_v52  ;;  %v1288_v1 = vrot.slane %v1187_v53, 2  ;;  %v1743_v36 = vmul.f32 %v2939_v18, %v3524_v43 }
  0x86   : > { %v591_v63 = vadd.f32 %v488_v6, %v346_v10  ;;  %v733_v0 = vsel %vm718_vm2, %v730_v27, %v732_v4  ;;  %v1428_v22 = vmul.f32 %v2871_v47, %v3383_v48  ;;  %v1600_v41 = vrot.slane %v1499_v57, 1 }
  0x87   : > { %v1475_v29 = vadd.f32 %v1443_v44, %v1407_v14  ;;  %v4937_v24 = vrot.slane %v3407_v49, 1  ;;  %v4938_v3 = vrot.slane %v3416_v19, 2  ;;  %v1844_v52 = vrot.slane %v1743_v36, 2 }
  0x88   : > { %v836_v53 = vadd.f32 %v733_v0, %v591_v63  ;;  %v4939_v10 = vrot.slane %v3432_v28, 1  ;;  %v3567_v27 = vsel %vm279_vm0, %v263_v16, 0.0  ;;  %v409_v14 = vmul.f32 %v2846_v33, %v3114_v2  ;;  %v240_v0 = vld [vmem:[%s2839_s11 + $0x78] sm:$0xff] }
  0x89   : > { %v1045_v7 = vsel %vm473_vm1, %v4937_v24, %v1044_v50  ;;  %v1289_v62 = vsel %vm718_vm2, %v4938_v3, %v1288_v1  ;;  %v1719_v44 = vadd.f32 %v1639_v21, %v1475_v29  ;;  %v4940_v49 = vrot.slane %v3442_v5, 2 }
  0x8a   : > { %v1601_v13 = vsel %vm473_vm1, %v4939_v10, %v1600_v41  ;;  %v362_v4 = vmul.f32 %v2844_v32, %v2987_v59  ;;  %v654_v28 = vmul.f32 %v2852_v37, %v3114_v2  ;;  %v904_v63 = vadd.f32 %v872_v46, %v836_v53  ;;  %v241_v53 = vld [vmem:[%s2839_s11 + $0x80] sm:$0xff] }
  0x8b   : > { %v1845_v19 = vsel %vm718_vm2, %v4940_v49, %v1844_v52  ;;  %v527_v50 = vrot.slane %v409_v14, 1  ;;  %v967_v16 = vmul.f32 %v2856_v39, %v3333_v25  ;;  %v1211_v29 = vmul.f32 %v2859_v40, %v3333_v25 }
  0x8c   : > { %v1963_v21 = vadd.f32 %v1883_v54, %v1719_v44  ;;  %v772_v5 = vrot.slane %v654_v28, 2  ;;  %v888_v57 = vmul.f32 %v2854_v38, %v3269_v55  ;;  %v1523_v59 = vmul.f32 %v2882_v51, %v3567_v27 }
  0x8d   : > { %v1148_v6 = vadd.f32 %v1045_v7, %v904_v63  ;;  %v4941_v2 = vrot.slane %v3465_v60, 1  ;;  %v1084_v1 = vrot.slane %v967_v16, 1  ;;  %v1328_v36 = vrot.slane %v1211_v29, 2 }
  0x8e   : > { %2478 = vmatprep.mubr.f32.mxu1 %v1963_v21  ;;  %v4942_v24 = vrot.slane %v3471_v56, 2  ;;  %v1640_v3 = vrot.slane %v1523_v59, 1  ;;  %v1767_v52 = vmul.f32 %v2939_v18, %v3567_v27  ;;  %v4943_v7 = vrot.slane %v3482_v42, 1 }
  0x8f   : > { %v528_v46 = vsel %vm473_vm1, %v4941_v2, %v527_v50  ;;  %v1392_v10 = vadd.f32 %v1289_v62, %v1148_v6  ;;  %v4944_v14 = vrot.slane %v3488_v15, 2  ;;  %v1444_v49 = vmul.f32 %v2871_v47, %v3457_v23 }
  0x90   : > { %v607_v41 = vadd.f32 %v528_v46, %v362_v4  ;;  %v773_v54 = vsel %vm718_vm2, %v4942_v24, %v772_v5  ;;  %v1085_v60 = vsel %vm473_vm1, %v4943_v7, %v1084_v1  ;;  %v4945_v4 = vrot.slane %v3506_v45, 1 }
  0x91   : > { %v1329_v44 = vsel %vm718_vm2, %v4944_v14, %v1328_v36  ;;  %v1884_v63 = vrot.slane %v1767_v52, 2  ;;  %v3608_v50 = vsel %vm279_vm0, %v240_v0, 0.0  ;;  %v1460_v62 = vadd.f32 %v1428_v22, %v1392_v10 }
  0x92   : > { %v852_v56 = vadd.f32 %v773_v54, %v607_v41  ;;  %v1641_v28 = vsel %vm473_vm1, %v4945_v4, %v1640_v3  ;;  %v3611_v42 = vsel %vm279_vm0, %v241_v53, 0.0  ;;  %v386_v15 = vmul.f32 %v2846_v33, %v3146_v12 }
  0x93   : > { %v3617_v16 = vmul.f32 %v2846_v33, %v3155_v11  ;;  %v347_v45 = vmul.f32 %v2844_v32, %v3146_v12  ;;  %v631_v21 = vmul.f32 %v2852_v37, %v3146_v12  ;;  %v3625_v22 = vmul.f32 %v2852_v37, %v3155_v11 }
  0x94   : > { %v920_v29 = vadd.f32 %v888_v57, %v852_v56  ;;  %v1704_v5 = vadd.f32 %v1601_v13, %v1460_v62  ;;  %v489_v59 = vrot.slane %v386_v15, 1  ;;  %v873_v2 = vmul.f32 %v2854_v38, %v3377_v8  ;;  %v264_v15 = vld [vmem:[%s2839_s11 + $0x138] sm:$0xff] }
  0x95   : > { %v490_v6 = vrot.slane %v3617_v16, 1  ;;  %v734_v1 = vrot.slane %v631_v21, 2  ;;  %v4894_v57 = vrot.slane %v3625_v22, 2  ;;  %v944_v36 = vmul.f32 %v2856_v39, %v3377_v8 }
  0x96   : > { %v1164_v46 = vadd.f32 %v1085_v60, %v920_v29  ;;  %v1948_v0 = vadd.f32 %v1845_v19, %v1704_v5  ;;  %v3638_v13 = vmul.f32 %v2856_v39, %v3383_v48  ;;  %v1188_v41 = vmul.f32 %v2859_v40, %v3377_v8 }
  0x97   : > { %v491_v12 = vsel %vm473_vm1, %v489_v59, %v490_v6  ;;  %v736_v3 = vsel %vm718_vm2, %v734_v1, %v4894_v57  ;;  %v1046_v52 = vrot.slane %v944_v36, 1  ;;  %v4946_v19 = vrot.slane %v3516_v31, 2 }
  0x98   : > { %v1408_v24 = vadd.f32 %v1329_v44, %v1164_v46  ;;  %v592_v54 = vadd.f32 %v491_v12, %v347_v45  ;;  %2455 = vmatmul.mubr.f32.gmra.mrb[4].mxu0 %v1948_v0  ;;  %v4893_v10 = vrot.slane %v3638_v13, 1  ;;  %v3651_v7 = vmul.f32 %v2859_v40, %v3383_v48 }
  0x99   : > { %v1885_v53 = vsel %vm718_vm2, %v4946_v19, %v1884_v63  ;;  %v1290_v60 = vrot.slane %v1188_v41, 2  ;;  %v1500_v56 = vmul.f32 %v2882_v51, %v3608_v50  ;;  %v3657_v4 = vmul.f32 %v2882_v51, %v3611_v42 }
  0x9a   : > { %v1476_v14 = vadd.f32 %v1444_v49, %v1408_v24  ;;  %v837_v44 = vadd.f32 %v736_v3, %v592_v54  ;;  %v1048_v31 = vsel %vm473_vm1, %v1046_v52, %v4893_v10  ;;  %v4892_v63 = vrot.slane %v3651_v7, 2 }
  0x9b   : > { %v1744_v62 = vmul.f32 %v2939_v18, %v3608_v50  ;;  %v3667_v49 = vmul.f32 %v2939_v18, %v3611_v42  ;;  %v1602_v21 = vrot.slane %v1500_v56, 1  ;;  %v4891_v5 = vrot.slane %v3657_v4, 1 }
  0x9c   : > { %v1720_v29 = vadd.f32 %v1641_v28, %v1476_v14  ;;  %v905_v45 = vadd.f32 %v873_v2, %v837_v44  ;;  %v1292_v59 = vsel %vm718_vm2, %v1290_v60, %v4892_v63  ;;  %v1429_v46 = vmul.f32 %v2871_v47, %v3608_v50 }
  0x9d   : > { %v1846_v1 = vrot.slane %v1744_v62, 2  ;;  %v4887_v36 = vrot.slane %v3667_v49, 2  ;;  %v1604_v28 = vsel %vm473_vm1, %v1602_v21, %v4891_v5  ;;  %v3681_v2 = vsel %vm279_vm0, %v264_v15, 0.0  ;;  %v265_v15 = vld [vmem:[%s2839_s11 + $0x140] sm:$0xff] }
  0x9e   : > { %v1964_v0 = vadd.f32 %v1885_v53, %v1720_v29  ;;  %v1149_v12 = vadd.f32 %v1048_v31, %v905_v45  ;;  %v363_v24 = vmul.f32 %v2844_v32, %v3225_v61  ;;  %v410_v54 = vmul.f32 %v2846_v33, %v3225_v61 }
  0x9f   : > { %v1848_v41 = vsel %vm718_vm2, %v1846_v1, %v4887_v36  ;;  %v3692_v3 = vmul.f32 %v2846_v33, %v3269_v55  ;;  %v655_v19 = vmul.f32 %v2852_v37, %v3225_v61  ;;  %v3698_v53 = vmul.f32 %v2852_v37, %v3269_v55  ;;  %v242_v36 = vld [vmem:[%s2839_s11 + $0x88] sm:$0x3] }
  0xa0   : > { %2479 = vmatmul.mubr.f32.gmra.mrb[4].mxu1 %v1964_v0  ;;  %v1393_v52 = vadd.f32 %v1292_v59, %v1149_v12  ;;  %v889_v60 = vmul.f32 %v2854_v38, %v3451_v30  ;;  %v529_v14 = vrot.slane %v410_v54, 1  ;;  %v968_v56 = vmul.f32 %v2856_v39, %v3451_v30 }
  0xa1   : > { %v4886_v44 = vrot.slane %v3692_v3, 1  ;;  %v3707_v31 = vmul.f32 %v2856_v39, %v3457_v23  ;;  %v774_v61 = vrot.slane %v655_v19, 2  ;;  %v4890_v29 = vrot.slane %v3698_v53, 2 }
  0xa2   : > { %v1461_v62 = vadd.f32 %v1429_v46, %v1393_v52  ;;  %v1212_v45 = vmul.f32 %v2859_v40, %v3451_v30  ;;  %v1086_v59 = vrot.slane %v968_v56, 1  ;;  %v3719_v0 = vmul.f32 %v2859_v40, %v3457_v23 }
  0xa3   : > { %v531_v21 = vsel %vm473_vm1, %v529_v14, %v4886_v44  ;;  %v4888_v1 = vrot.slane %v3707_v31, 1  ;;  %v776_v54 = vsel %vm718_vm2, %v774_v61, %v4890_v29  ;;  %v3725_v19 = vsel %vm279_vm0, %v265_v15, 0.0 }
  0xa4   : > { %v1705_v46 = vadd.f32 %v1604_v28, %v1461_v62  ;;  %v608_v12 = vadd.f32 %v531_v21, %v363_v24  ;;  %v1330_v52 = vrot.slane %v1212_v45, 2  ;;  %v4889_v56 = vrot.slane %v3719_v0, 2 }
  0xa5   : > { %v1088_v14 = vsel %vm473_vm1, %v1086_v59, %v4888_v1  ;;  %v1524_v44 = vmul.f32 %v2882_v51, %v3681_v2  ;;  %v3736_v62 = vmul.f32 %v2882_v51, %v3725_v19  ;;  %v1768_v15 = vmul.f32 %v2939_v18, %v3681_v2 }
  0xa6   : > { %v1949_v28 = vadd.f32 %v1848_v41, %v1705_v46  ;;  %v853_v24 = vadd.f32 %v776_v54, %v608_v12  ;;  %v1332_v61 = vsel %vm718_vm2, %v1330_v52, %v4889_v56  ;;  %v1445_v45 = vmul.f32 %v2871_v47, %v3681_v2 }
  0xa7   : > { %v1642_v21 = vrot.slane %v1524_v44, 1  ;;  %v3747_v59 = vmul.f32 %v2939_v18, %v3725_v19  ;;  %v1643_v46 = vrot.slane %v3736_v62, 1  ;;  %v1886_v12 = vrot.slane %v1768_v15, 2 }
  0xa8   : > { %2457 = vmatprep.mubr.f32.mxu0 %v1949_v28  ;;  %v921_v41 = vadd.f32 %v889_v60, %v853_v24  ;;  %v3751_v54 = vsel %vm279_vm0, %v242_v36, 0.0  ;;  %v348_v52 = vmul.f32 %v2844_v32, %v3155_v11  ;;  %v388_v44 = vmul.f32 %v2846_v33, %v3295_v9 }
  0xa9   : > { %v1887_v1 = vrot.slane %v3747_v59, 2  ;;  %v633_v56 = vmul.f32 %v2852_v37, %v3295_v9  ;;  %v874_v60 = vmul.f32 %v2854_v38, %v3383_v48  ;;  %v946_v24 = vmul.f32 %v2856_v39, %v3524_v43 }
  0xaa   : > { %v1165_v28 = vadd.f32 %v1088_v14, %v921_v41  ;;  %v1190_v36 = vmul.f32 %v2859_v40, %v3524_v43  ;;  %v1644_v11 = vsel %vm473_vm1, %v1642_v21, %v1643_v46  ;;  %v492_v29 = vrot.slane %v388_v44, 1  ;;  %v266_v14 = vld [vmem:[%s2839_s11 + $0x148] sm:$0x3] }
  0xab   : > { %v1888_v15 = vsel %vm718_vm2, %v1886_v12, %v1887_v1  ;;  %v737_v9 = vrot.slane %v633_v56, 2  ;;  %v1049_v5 = vrot.slane %v946_v24, 1  ;;  %v1502_v10 = vmul.f32 %v2882_v51, %v3751_v54 }
  0xac   : > { %v1409_v41 = vadd.f32 %v1332_v61, %v1165_v28  ;;  %v1293_v63 = vrot.slane %v1190_v36, 2  ;;  %v493_v57 = vsel %vm473_vm1, %v490_v6, %v492_v29  ;;  %v4947_v58 = vrot.slane %v3625_v22, 2 }
  0xad   : > { %v1430_v12 = vmul.f32 %v2871_v47, %v3611_v42  ;;  %v1746_v56 = vmul.f32 %v2939_v18, %v3751_v54  ;;  %v593_v44 = vadd.f32 %v493_v57, %v348_v52  ;;  %v4948_v28 = vrot.slane %v3638_v13, 1 }
  0xae   : > { %v738_v21 = vsel %vm718_vm2, %v4947_v58, %v737_v9  ;;  %v1477_v61 = vadd.f32 %v1445_v45, %v1409_v41  ;;  %v3789_v16 = vsel %vm279_vm0, %v266_v14, 0.0  ;;  %v4949_v6 = vrot.slane %v3651_v7, 2 }
  0xaf   : > { %v1050_v24 = vsel %vm473_vm1, %v4948_v28, %v1049_v5  ;;  %v1605_v58 = vrot.slane %v1502_v10, 1  ;;  %v1849_v29 = vrot.slane %v1746_v56, 2  ;;  %v412_v36 = vmul.f32 %v2846_v33, %v3333_v25  ;;  %v243_v28 = vld [vmem:[%s2839_s11 + $0x90] sm:$0xff] }
  0xb0   : > { %v1294_v22 = vsel %vm718_vm2, %v4949_v6, %v1293_v63  ;;  %v1721_v9 = vadd.f32 %v1644_v11, %v1477_v61  ;;  %v838_v45 = vadd.f32 %v738_v21, %v593_v44  ;;  %v364_v57 = vmul.f32 %v2844_v32, %v3269_v55 }
  0xb1   : > { %v657_v13 = vmul.f32 %v2852_v37, %v3333_v25  ;;  %v4950_v5 = vrot.slane %v3657_v4, 1  ;;  %v532_v52 = vrot.slane %v412_v36, 1  ;;  %v890_v10 = vmul.f32 %v2854_v38, %v3457_v23 }
  0xb2   : > { %v970_v63 = vmul.f32 %v2856_v39, %v3567_v27  ;;  %v1965_v11 = vadd.f32 %v1888_v15, %v1721_v9  ;;  %v906_v14 = vadd.f32 %v874_v60, %v838_v45  ;;  %v1214_v55 = vmul.f32 %v2859_v40, %v3567_v27 }
  0xb3   : > { %v1606_v7 = vsel %vm473_vm1, %v4950_v5, %v1605_v58  ;;  %v777_v41 = vrot.slane %v657_v13, 2  ;;  %v4951_v25 = vrot.slane %v3667_v49, 2  ;;  %v4952_v21 = vrot.slane %v3692_v3, 1  ;;  %v244_v49 = vld [vmem:[%s2839_s11 + $0x98] sm:$0xff] }
  0xb4   : > { %v1089_v61 = vrot.slane %v970_v63, 1  ;;  %v1526_v44 = vmul.f32 %v2882_v51, %v3789_v16  ;;  %2481 = vmatprep.mubr.f32.mxu1 %v1965_v11  ;;  %v1150_v15 = vadd.f32 %v1050_v24, %v906_v14  ;;  %v4953_v6 = vrot.slane %v3698_v53, 2 }
  0xb5   : > { %v1850_v4 = vsel %vm718_vm2, %v4951_v25, %v1849_v29  ;;  %v533_v56 = vsel %vm473_vm1, %v4952_v21, %v532_v52  ;;  %v1333_v36 = vrot.slane %v1214_v55, 2  ;;  %v4954_v29 = vrot.slane %v3707_v31, 1 }
  0xb6   : > { %v609_v60 = vadd.f32 %v533_v56, %v364_v57  ;;  %v778_v58 = vsel %vm718_vm2, %v4953_v6, %v777_v41  ;;  %v1446_v9 = vmul.f32 %v2871_v47, %v3725_v19  ;;  %v1645_v45 = vrot.slane %v1526_v44, 1 }
  0xb7   : > { %v1090_v3 = vsel %vm473_vm1, %v4954_v29, %v1089_v61  ;;  %v1770_v13 = vmul.f32 %v2939_v18, %v3789_v16  ;;  %v1394_v5 = vadd.f32 %v1294_v22, %v1150_v15  ;;  %v4955_v57 = vrot.slane %v3719_v0, 2 }
  0xb8   : > { %v854_v24 = vadd.f32 %v778_v58, %v609_v60  ;;  %v3833_v52 = vsel %vm279_vm0, %v243_v28, 0.0  ;;  %v1646_v31 = vsel %vm473_vm1, %v1643_v46, %v1645_v45  ;;  %v3839_v11 = vsel %vm279_vm0, %v244_v49, 0.0 }
  0xb9   : > { %v1334_v53 = vsel %vm718_vm2, %v4955_v57, %v1333_v36  ;;  %v1889_v63 = vrot.slane %v1770_v13, 2  ;;  %v389_v14 = vmul.f32 %v2846_v33, %v3377_v8  ;;  %v1462_v22 = vadd.f32 %v1430_v12, %v1394_v5 }
  0xba   : > { %v922_v41 = vadd.f32 %v890_v10, %v854_v24  ;;  %v3845_v0 = vmul.f32 %v2846_v33, %v3383_v48  ;;  %v634_v55 = vmul.f32 %v2852_v37, %v3377_v8  ;;  %v349_v62 = vmul.f32 %v2844_v32, %v3377_v8 }
  0xbb   : > { %v494_v46 = vrot.slane %v389_v14, 1  ;;  %v3853_v25 = vmul.f32 %v2852_v37, %v3383_v48  ;;  %v875_v21 = vmul.f32 %v2854_v38, %v3608_v50  ;;  %v1706_v12 = vadd.f32 %v1606_v7, %v1462_v22  ;;  %v267_v22 = vld [vmem:[%s2839_s11 + $0x150] sm:$0xff] }
  0xbc   : > { %v1166_v10 = vadd.f32 %v1090_v3, %v922_v41  ;;  %v495_v56 = vrot.slane %v3845_v0, 1  ;;  %v739_v61 = vrot.slane %v634_v55, 2  ;;  %v947_v28 = vmul.f32 %v2856_v39, %v3608_v50  ;;  %v268_v41 = vld [vmem:[%s2839_s11 + $0x158] sm:$0xff] }
  0xbd   : > { %v740_v44 = vrot.slane %v3853_v25, 2  ;;  %v3863_v8 = vmul.f32 %v2856_v39, %v3611_v42  ;;  %v1191_v15 = vmul.f32 %v2859_v40, %v3608_v50  ;;  %v1950_v60 = vadd.f32 %v1850_v4, %v1706_v12 }
  0xbe   : > { %v1410_v6 = vadd.f32 %v1334_v53, %v1166_v10  ;;  %v496_v7 = vsel %vm473_vm1, %v494_v46, %v495_v56  ;;  %v3872_v58 = vmul.f32 %v2859_v40, %v3611_v42  ;;  %v1051_v29 = vrot.slane %v947_v28, 1 }
  0xbf   : > { %v594_v36 = vadd.f32 %v496_v7, %v349_v62  ;;  %v741_v49 = vsel %vm718_vm2, %v739_v61, %v740_v44  ;;  %v1052_v3 = vrot.slane %v3863_v8, 1  ;;  %2458 = vmatmul.mubr.f32.gmra.mrb[6].mxu0 %v1950_v60  ;;  %v1890_v45 = vsel %vm718_vm2, %v1887_v1, %v1889_v63 }
  0xc0   : > { %v1478_v4 = vadd.f32 %v1446_v9, %v1410_v6  ;;  %v1295_v13 = vrot.slane %v1191_v15, 2  ;;  %v4901_v5 = vrot.slane %v3872_v58, 2  ;;  %v1431_v57 = vmul.f32 %v2871_v47, %v3833_v52 }
  0xc1   : > { %v839_v24 = vadd.f32 %v741_v49, %v594_v36  ;;  %v1503_v53 = vmul.f32 %v2882_v51, %v3833_v52  ;;  %v3888_v14 = vmul.f32 %v2882_v51, %v3839_v11  ;;  %v1053_v1 = vsel %vm473_vm1, %v1051_v29, %v1052_v3 }
  0xc2   : > { %v1722_v9 = vadd.f32 %v1646_v31, %v1478_v4  ;;  %v1747_v59 = vmul.f32 %v2939_v18, %v3833_v52  ;;  %v3898_v63 = vmul.f32 %v2939_v18, %v3839_v11  ;;  %v1297_v62 = vsel %vm718_vm2, %v1295_v13, %v4901_v5 }
  0xc3   : > { %v907_v55 = vadd.f32 %v875_v21, %v839_v24  ;;  %v1607_v46 = vrot.slane %v1503_v53, 1  ;;  %v4900_v31 = vrot.slane %v3888_v14, 1  ;;  %v3907_v28 = vsel %vm279_vm0, %v267_v22, 0.0 }
  0xc4   : > { %v1966_v12 = vadd.f32 %v1890_v45, %v1722_v9  ;;  %v1851_v10 = vrot.slane %v1747_v59, 2  ;;  %v4899_v61 = vrot.slane %v3898_v63, 2  ;;  %v3913_v21 = vsel %vm279_vm0, %v268_v41, 0.0 }
  0xc5   : > { %v1151_v15 = vadd.f32 %v1053_v1, %v907_v55  ;;  %v1609_v60 = vsel %vm473_vm1, %v1607_v46, %v4900_v31  ;;  %v413_v6 = vmul.f32 %v2846_v33, %v3451_v30  ;;  %v365_v7 = vmul.f32 %v2844_v32, %v3451_v30 }
  0xc6   : > { %2482 = vmatmul.mubr.f32.gmra.mrb[6].mxu1 %v1966_v12  ;;  %v3921_v36 = vmul.f32 %v2846_v33, %v3457_v23  ;;  %v658_v49 = vmul.f32 %v2852_v37, %v3451_v30  ;;  %v3927_v29 = vmul.f32 %v2852_v37, %v3457_v23  ;;  %v1853_v45 = vsel %vm718_vm2, %v1851_v10, %v4899_v61 }
  0xc7   : > { %v1395_v4 = vadd.f32 %v1297_v62, %v1151_v15  ;;  %v534_v13 = vrot.slane %v413_v6, 1  ;;  %v971_v24 = vmul.f32 %v2856_v39, %v3681_v2  ;;  %v3938_v30 = vmul.f32 %v2856_v39, %v3725_v19 }
  0xc8   : > { %v4898_v53 = vrot.slane %v3921_v36, 1  ;;  %v779_v22 = vrot.slane %v658_v49, 2  ;;  %v4897_v9 = vrot.slane %v3927_v29, 2  ;;  %v1215_v41 = vmul.f32 %v2859_v40, %v3681_v2 }
  0xc9   : > { %v1463_v1 = vadd.f32 %v1431_v57, %v1395_v4  ;;  %v1091_v59 = vrot.slane %v971_v24, 1  ;;  %v3944_v55 = vmul.f32 %v2859_v40, %v3725_v19  ;;  %v891_v57 = vmul.f32 %v2854_v38, %v3681_v2 }
  0xca   : > { %v536_v62 = vsel %vm473_vm1, %v534_v13, %v4898_v53  ;;  %v781_v46 = vsel %vm718_vm2, %v779_v22, %v4897_v9  ;;  %v4904_v12 = vrot.slane %v3938_v30, 1  ;;  %v1335_v6 = vrot.slane %v1215_v41, 2  ;;  %v245_v9 = vld [vmem:[%s2839_s11 + $0xa0] sm:$0x3] }
  0xcb   : > { %v1707_v10 = vadd.f32 %v1609_v60, %v1463_v1  ;;  %v610_v15 = vadd.f32 %v536_v62, %v365_v7  ;;  %v4903_v49 = vrot.slane %v3944_v55, 2  ;;  %v1447_v4 = vmul.f32 %v2871_v47, %v3907_v28 }
  0xcc   : > { %v1527_v13 = vmul.f32 %v2882_v51, %v3907_v28  ;;  %v3962_v24 = vmul.f32 %v2882_v51, %v3913_v21  ;;  %v1771_v22 = vmul.f32 %v2939_v18, %v3907_v28  ;;  %v1093_v7 = vsel %vm473_vm1, %v1091_v59, %v4904_v12 }
  0xcd   : > { %v1951_v53 = vadd.f32 %v1853_v45, %v1707_v10  ;;  %v855_v60 = vadd.f32 %v781_v46, %v610_v15  ;;  %v3972_v1 = vmul.f32 %v2939_v18, %v3913_v21  ;;  %v1337_v41 = vsel %vm718_vm2, %v1335_v6, %v4903_v49  ;;  %v269_v49 = vld [vmem:[%s2839_s11 + $0x160] sm:$0x3] }
  0xce   : > { %v1647_v62 = vrot.slane %v1527_v13, 1  ;;  %v4902_v61 = vrot.slane %v3962_v24, 1  ;;  %v1891_v31 = vrot.slane %v1771_v22, 2  ;;  %v3980_v46 = vsel %vm279_vm0, %v245_v9, 0.0 }
  0xcf   : > { %2460 = vmatprep.mubr.f32.mxu0 %v1951_v53  ;;  %v923_v5 = vadd.f32 %v891_v57, %v855_v60  ;;  %v4905_v45 = vrot.slane %v3972_v1, 2  ;;  %v391_v59 = vmul.f32 %v2846_v33, %v3524_v43  ;;  %v350_v15 = vmul.f32 %v2844_v32, %v3383_v48 }
  0xd0   : > { %v1649_v10 = vsel %vm473_vm1, %v1647_v62, %v4902_v61  ;;  %v636_v53 = vmul.f32 %v2852_v37, %v3524_v43  ;;  %v949_v57 = vmul.f32 %v2856_v39, %v3751_v54  ;;  %v876_v13 = vmul.f32 %v2854_v38, %v3611_v42 }
  0xd1   : > { %v1167_v6 = vadd.f32 %v1093_v7, %v923_v5  ;;  %v497_v9 = vrot.slane %v391_v59, 1  ;;  %v1193_v22 = vmul.f32 %v2859_v40, %v3751_v54  ;;  %v1893_v60 = vsel %vm718_vm2, %v1891_v31, %v4905_v45 }
  0xd2   : > { %v742_v62 = vrot.slane %v636_v53, 2  ;;  %v1054_v48 = vrot.slane %v949_v57, 1  ;;  %v1505_v43 = vmul.f32 %v2882_v51, %v3980_v46  ;;  %v1749_v59 = vmul.f32 %v2939_v18, %v3980_v46 }
  0xd3   : > { %v1411_v61 = vadd.f32 %v1337_v41, %v1167_v6  ;;  %v498_v5 = vsel %vm473_vm1, %v495_v56, %v497_v9  ;;  %v1298_v7 = vrot.slane %v1193_v22, 2  ;;  %v1432_v53 = vmul.f32 %v2871_v47, %v3839_v11 }
  0xd4   : > { %v595_v12 = vadd.f32 %v498_v5, %v350_v15  ;;  %v743_v31 = vsel %vm718_vm2, %v740_v44, %v742_v62  ;;  %v1610_v57 = vrot.slane %v1505_v43, 1  ;;  %v1055_v0 = vsel %vm473_vm1, %v1052_v3, %v1054_v48 }
  0xd5   : > { %v1479_v45 = vadd.f32 %v1447_v4, %v1411_v61  ;;  %v4956_v56 = vrot.slane %v3872_v58, 2  ;;  %v1854_v6 = vrot.slane %v1749_v59, 2  ;;  %v4957_v15 = vrot.slane %v3888_v14, 1 }
  0xd6   : > { %v840_v9 = vadd.f32 %v743_v31, %v595_v12  ;;  %v4023_v44 = vsel %vm279_vm0, %v269_v49, 0.0  ;;  %v415_v61 = vmul.f32 %v2846_v33, %v3567_v27  ;;  %v4958_v8 = vrot.slane %v3898_v63, 2 }
  0xd7   : > { %v1299_v41 = vsel %vm718_vm2, %v4956_v56, %v1298_v7  ;;  %v1611_v25 = vsel %vm473_vm1, %v4957_v15, %v1610_v57  ;;  %v1723_v4 = vadd.f32 %v1649_v10, %v1479_v45  ;;  %v366_v3 = vmul.f32 %v2844_v32, %v3457_v23  ;;  %v246_v7 = vld [vmem:[%s2839_s11 + $0xa8] sm:$0xff] }
  0xd8   : > { %v1855_v58 = vsel %vm718_vm2, %v4958_v8, %v1854_v6  ;;  %v660_v14 = vmul.f32 %v2852_v37, %v3567_v27  ;;  %v908_v12 = vadd.f32 %v876_v13, %v840_v9  ;;  %v537_v22 = vrot.slane %v415_v61, 1  ;;  %v247_v6 = vld [vmem:[%s2839_s11 + $0xb0] sm:$0xff] }
  0xd9   : > { %v973_v49 = vmul.f32 %v2856_v39, %v3789_v16  ;;  %v1217_v45 = vmul.f32 %v2859_v40, %v3789_v16  ;;  %v1967_v10 = vadd.f32 %v1893_v60, %v1723_v4  ;;  %v892_v62 = vmul.f32 %v2854_v38, %v3725_v19 }
  0xda   : > { %v782_v63 = vrot.slane %v660_v14, 2  ;;  %v1529_v23 = vmul.f32 %v2882_v51, %v4023_v44  ;;  %v1152_v48 = vadd.f32 %v1055_v0, %v908_v12  ;;  %v4959_v27 = vrot.slane %v3921_v36, 1 }
  0xdb   : > { %v1094_v43 = vrot.slane %v973_v49, 1  ;;  %v1338_v5 = vrot.slane %v1217_v45, 2  ;;  %2484 = vmatprep.mubr.f32.mxu1 %v1967_v10  ;;  %v4960_v31 = vrot.slane %v3927_v29, 2  ;;  %v1773_v56 = vmul.f32 %v2939_v18, %v4023_v44 }
  0xdc   : > { %v538_v13 = vsel %vm473_vm1, %v4959_v27, %v537_v22  ;;  %v1650_v57 = vrot.slane %v1529_v23, 1  ;;  %v1396_v9 = vadd.f32 %v1299_v41, %v1152_v48  ;;  %v4961_v0 = vrot.slane %v3938_v30, 1 }
  0xdd   : > { %v611_v59 = vadd.f32 %v538_v13, %v366_v3  ;;  %v783_v60 = vsel %vm718_vm2, %v4960_v31, %v782_v63  ;;  %v4962_v15 = vrot.slane %v3944_v55, 2  ;;  %v1448_v4 = vmul.f32 %v2871_v47, %v3913_v21 }
  0xde   : > { %v1095_v36 = vsel %vm473_vm1, %v4961_v0, %v1094_v43  ;;  %v4963_v8 = vrot.slane %v3962_v24, 1  ;;  %v1894_v14 = vrot.slane %v1773_v56, 2  ;;  %v4064_v12 = vsel %vm279_vm0, %v246_v7, 0.0 }
  0xdf   : > { %v1339_v61 = vsel %vm718_vm2, %v4962_v15, %v1338_v5  ;;  %v856_v29 = vadd.f32 %v783_v60, %v611_v59  ;;  %v1464_v41 = vadd.f32 %v1432_v53, %v1396_v9  ;;  %v4067_v30 = vsel %vm279_vm0, %v247_v6, 0.0 }
  0xe0   : > { %v1651_v3 = vsel %vm473_vm1, %v4963_v8, %v1650_v57  ;;  %v392_v55 = vmul.f32 %v2846_v33, %v3608_v50  ;;  %v4073_v22 = vmul.f32 %v2846_v33, %v3611_v42  ;;  %v351_v24 = vmul.f32 %v2844_v32, %v3608_v50 }
  0xe1   : > { %v924_v49 = vadd.f32 %v892_v62, %v856_v29  ;;  %v637_v45 = vmul.f32 %v2852_v37, %v3608_v50  ;;  %v4081_v53 = vmul.f32 %v2852_v37, %v3611_v42  ;;  %v1708_v10 = vadd.f32 %v1611_v25, %v1464_v41  ;;  %v270_v41 = vld [vmem:[%s2839_s11 + $0x168] sm:$0xff] }
  0xe2   : > { %v499_v63 = vrot.slane %v392_v55, 1  ;;  %v500_v23 = vrot.slane %v4073_v22, 1  ;;  %v877_v48 = vmul.f32 %v2854_v38, %v3833_v52  ;;  %v950_v43 = vmul.f32 %v2856_v39, %v3833_v52 }
  0xe3   : > { %v1168_v27 = vadd.f32 %v1095_v36, %v924_v49  ;;  %v744_v13 = vrot.slane %v637_v45, 2  ;;  %v745_v62 = vrot.slane %v4081_v53, 2  ;;  %v1952_v5 = vadd.f32 %v1855_v58, %v1708_v10 }
  0xe4   : > { %v501_v50 = vsel %vm473_vm1, %v499_v63, %v500_v23  ;;  %v4094_v25 = vmul.f32 %v2856_v39, %v3839_v11  ;;  %v1194_v7 = vmul.f32 %v2859_v40, %v3833_v52  ;;  %v1056_v57 = vrot.slane %v950_v43, 1 }
  0xe5   : > { %v1412_v59 = vadd.f32 %v1339_v61, %v1168_v27  ;;  %v596_v31 = vadd.f32 %v501_v50, %v351_v24  ;;  %v746_v60 = vsel %vm718_vm2, %v744_v13, %v745_v62  ;;  %2461 = vmatmul.mubr.f32.gmra.mrb[8].mxu0 %v1952_v5  ;;  %v4964_v58 = vrot.slane %v3972_v1, 2 }
  0xe6   : > { %v4913_v6 = vrot.slane %v4094_v25, 1  ;;  %v4107_v9 = vmul.f32 %v2859_v40, %v3839_v11  ;;  %v1300_v0 = vrot.slane %v1194_v7, 2  ;;  %v1506_v61 = vmul.f32 %v2882_v51, %v4064_v12 }
  0xe7   : > { %v1895_v56 = vsel %vm718_vm2, %v4964_v58, %v1894_v14  ;;  %v1480_v36 = vadd.f32 %v1448_v4, %v1412_v59  ;;  %v841_v15 = vadd.f32 %v746_v60, %v596_v31  ;;  %v4113_v29 = vmul.f32 %v2882_v51, %v4067_v30 }
  0xe8   : > { %v1058_v1 = vsel %vm473_vm1, %v1056_v57, %v4913_v6  ;;  %v4912_v8 = vrot.slane %v4107_v9, 2  ;;  %v1750_v14 = vmul.f32 %v2939_v18, %v4064_v12  ;;  %v4123_v4 = vmul.f32 %v2939_v18, %v4067_v30 }
  0xe9   : > { %v1724_v55 = vadd.f32 %v1651_v3, %v1480_v36  ;;  %v909_v49 = vadd.f32 %v877_v48, %v841_v15  ;;  %v1612_v24 = vrot.slane %v1506_v61, 1  ;;  %v4911_v45 = vrot.slane %v4113_v29, 1 }
  0xea   : > { %v1302_v10 = vsel %vm718_vm2, %v1300_v0, %v4912_v8  ;;  %v1433_v63 = vmul.f32 %v2871_v47, %v4064_v12  ;;  %v1856_v27 = vrot.slane %v1750_v14, 2  ;;  %v4910_v13 = vrot.slane %v4123_v4, 2  ;;  %v271_v14 = vld [vmem:[%s2839_s11 + $0x170] sm:$0xff] }
  0xeb   : > { %v1968_v43 = vadd.f32 %v1895_v56, %v1724_v55  ;;  %v1153_v5 = vadd.f32 %v1058_v1, %v909_v49  ;;  %v1614_v3 = vsel %vm473_vm1, %v1612_v24, %v4911_v45  ;;  %v4137_v48 = vsel %vm279_vm0, %v270_v41, 0.0 }
  0xec   : > { %v1858_v50 = vsel %vm718_vm2, %v1856_v27, %v4910_v13  ;;  %v367_v7 = vmul.f32 %v2844_v32, %v3681_v2  ;;  %v416_v59 = vmul.f32 %v2846_v33, %v3681_v2  ;;  %v4148_v31 = vmul.f32 %v2846_v33, %v3725_v19 }
  0xed   : > { %2485 = vmatmul.mubr.f32.gmra.mrb[8].mxu1 %v1968_v43  ;;  %v1397_v60 = vadd.f32 %v1302_v10, %v1153_v5  ;;  %v661_v57 = vmul.f32 %v2852_v37, %v3681_v2  ;;  %v4154_v58 = vmul.f32 %v2852_v37, %v3725_v19  ;;  %v893_v56 = vmul.f32 %v2854_v38, %v3907_v28 }
  0xee   : > { %v539_v0 = vrot.slane %v416_v59, 1  ;;  %v4906_v36 = vrot.slane %v4148_v31, 1  ;;  %v974_v15 = vmul.f32 %v2856_v39, %v3907_v28  ;;  %v4163_v61 = vmul.f32 %v2856_v39, %v3913_v21 }
  0xef   : > { %v1465_v1 = vadd.f32 %v1433_v63, %v1397_v60  ;;  %v784_v2 = vrot.slane %v661_v57, 2  ;;  %v4909_v41 = vrot.slane %v4154_v58, 2  ;;  %v1218_v55 = vmul.f32 %v2859_v40, %v3907_v28 }
  0xf0   : > { %v541_v49 = vsel %vm473_vm1, %v539_v0, %v4906_v36  ;;  %v1096_v24 = vrot.slane %v974_v15, 1  ;;  %v4907_v10 = vrot.slane %v4163_v61, 1  ;;  %v4175_v27 = vmul.f32 %v2859_v40, %v3913_v21  ;;  %v248_v36 = vld [vmem:[%s2839_s11 + $0xb8] sm:$0x3] }
  0xf1   : > { %v1709_v63 = vadd.f32 %v1614_v3, %v1465_v1  ;;  %v612_v43 = vadd.f32 %v541_v49, %v367_v7  ;;  %v786_v5 = vsel %vm718_vm2, %v784_v2, %v4909_v41  ;;  %v1340_v59 = vrot.slane %v1218_v55, 2 }
  0xf2   : > { %v4181_v60 = vsel %vm279_vm0, %v271_v14, 0.0  ;;  %v1098_v57 = vsel %vm473_vm1, %v1096_v24, %v4907_v10  ;;  %v4908_v0 = vrot.slane %v4175_v27, 2  ;;  %v1530_v15 = vmul.f32 %v2882_v51, %v4137_v48 }
  0xf3   : > { %v1953_v3 = vadd.f32 %v1858_v50, %v1709_v63  ;;  %v857_v7 = vadd.f32 %v786_v5, %v612_v43  ;;  %v4192_v1 = vmul.f32 %v2882_v51, %v4181_v60  ;;  %v1774_v14 = vmul.f32 %v2939_v18, %v4137_v48 }
  0xf4   : > { %v1342_v2 = vsel %vm718_vm2, %v1340_v59, %v4908_v0  ;;  %v1449_v55 = vmul.f32 %v2871_v47, %v4137_v48  ;;  %v1652_v49 = vrot.slane %v1530_v15, 1  ;;  %v4203_v24 = vmul.f32 %v2939_v18, %v4181_v60 }
  0xf5   : > { %2463 = vmatprep.mubr.f32.mxu0 %v1953_v3  ;;  %v925_v50 = vadd.f32 %v893_v56, %v857_v7  ;;  %v1653_v63 = vrot.slane %v4192_v1, 1  ;;  %v1896_v43 = vrot.slane %v1774_v14, 2  ;;  %v4207_v5 = vsel %vm279_vm0, %v248_v36, 0.0 }
  0xf6   : > { %v4914_v10 = vrot.slane %v4203_v24, 2  ;;  %v352_v59 = vmul.f32 %v2844_v32, %v3611_v42  ;;  %v394_v15 = vmul.f32 %v2846_v33, %v3751_v54  ;;  %v639_v0 = vmul.f32 %v2852_v37, %v3751_v54 }
  0xf7   : > { %v1169_v3 = vadd.f32 %v1098_v57, %v925_v50  ;;  %v878_v56 = vmul.f32 %v2854_v38, %v3839_v11  ;;  %v952_v7 = vmul.f32 %v2856_v39, %v3980_v46  ;;  %v1196_v36 = vmul.f32 %v2859_v40, %v3980_v46  ;;  %v272_v57 = vld [vmem:[%s2839_s11 + $0x178] sm:$0x3] }
  0xf8   : > { %v1654_v42 = vsel %vm473_vm1, %v1652_v49, %v1653_v63  ;;  %v1898_v14 = vsel %vm718_vm2, %v1896_v43, %v4914_v10  ;;  %v502_v41 = vrot.slane %v394_v15, 1  ;;  %v747_v54 = vrot.slane %v639_v0, 2 }
  0xf9   : > { %v1413_v50 = vadd.f32 %v1342_v2, %v1169_v3  ;;  %v1059_v13 = vrot.slane %v952_v7, 1  ;;  %v1303_v45 = vrot.slane %v1196_v36, 2  ;;  %v1508_v8 = vmul.f32 %v2882_v51, %v4207_v5 }
  0xfa   : > { %v503_v6 = vsel %vm473_vm1, %v500_v23, %v502_v41  ;;  %v748_v49 = vsel %vm718_vm2, %v745_v62, %v747_v54  ;;  %v1434_v43 = vmul.f32 %v2871_v47, %v4067_v30  ;;  %v1752_v0 = vmul.f32 %v2939_v18, %v4207_v5 }
  0xfb   : > { %v1481_v2 = vadd.f32 %v1449_v55, %v1413_v50  ;;  %v597_v15 = vadd.f32 %v503_v6, %v352_v59  ;;  %v4965_v3 = vrot.slane %v4094_v25, 1  ;;  %v4245_v22 = vsel %vm279_vm0, %v272_v57, 0.0 }
  0xfc   : > { %v4966_v23 = vrot.slane %v4107_v9, 2  ;;  %v1615_v62 = vrot.slane %v1508_v8, 1  ;;  %v1859_v41 = vrot.slane %v1752_v0, 2  ;;  %v418_v36 = vmul.f32 %v2846_v33, %v3789_v16 }
  0xfd   : > { %v1060_v7 = vsel %vm473_vm1, %v4965_v3, %v1059_v13  ;;  %v1725_v54 = vadd.f32 %v1654_v42, %v1481_v2  ;;  %v842_v10 = vadd.f32 %v748_v49, %v597_v15  ;;  %v368_v6 = vmul.f32 %v2844_v32, %v3725_v19 }
  0xfe   : > { %v1304_v53 = vsel %vm718_vm2, %v4966_v23, %v1303_v45  ;;  %v663_v25 = vmul.f32 %v2852_v37, %v3789_v16  ;;  %v4967_v13 = vrot.slane %v4113_v29, 1  ;;  %v542_v9 = vrot.slane %v418_v36, 1 }
  0xff   : > { %v894_v8 = vmul.f32 %v2854_v38, %v3913_v21  ;;  %v976_v45 = vmul.f32 %v2856_v39, %v4023_v44  ;;  %v1969_v59 = vadd.f32 %v1898_v14, %v1725_v54  ;;  %v910_v42 = vadd.f32 %v878_v56, %v842_v10 }
 0x100   : > { %v1616_v55 = vsel %vm473_vm1, %v4967_v13, %v1615_v62  ;;  %v787_v57 = vrot.slane %v663_v25, 2  ;;  %v1220_v19 = vmul.f32 %v2859_v40, %v4023_v44  ;;  %v4968_v50 = vrot.slane %v4123_v4, 2 }
 0x101   : > { %v4969_v29 = vrot.slane %v4148_v31, 1  ;;  %v1099_v0 = vrot.slane %v976_v45, 1  ;;  %v1532_v2 = vmul.f32 %v2882_v51, %v4245_v22  ;;  %2487 = vmatprep.mubr.f32.mxu1 %v1969_v59  ;;  %v1154_v15 = vadd.f32 %v1060_v7, %v910_v42 }
 0x102   : > { %v1860_v16 = vsel %vm718_vm2, %v4968_v50, %v1859_v41  ;;  %v4970_v10 = vrot.slane %v4154_v58, 2  ;;  %v1343_v3 = vrot.slane %v1220_v19, 2  ;;  %v4971_v4 = vrot.slane %v4163_v61, 1 }
 0x103   : > { %v543_v49 = vsel %vm473_vm1, %v4969_v29, %v542_v9  ;;  %v1450_v31 = vmul.f32 %v2871_v47, %v4181_v60  ;;  %v1655_v62 = vrot.slane %v1532_v2, 1  ;;  %v1776_v41 = vmul.f32 %v2939_v18, %v4245_v22 }
 0x104   : > { %v613_v14 = vadd.f32 %v543_v49, %v368_v6  ;;  %v788_v56 = vsel %vm718_vm2, %v4970_v10, %v787_v57  ;;  %v1100_v23 = vsel %vm473_vm1, %v4971_v4, %v1099_v0  ;;  %v1398_v36 = vadd.f32 %v1304_v53, %v1154_v15 }
 0x105   : > { %v353_v7 = vmul.f32 %v2844_v32, %v3833_v52  ;;  %v395_v58 = vmul.f32 %v2846_v33, %v3833_v52  ;;  %v4972_v6 = vrot.slane %v4175_v27, 2  ;;  %v1656_v25 = vsel %vm473_vm1, %v1653_v63, %v1655_v62 }
 0x106   : > { %v858_v54 = vadd.f32 %v788_v56, %v613_v14  ;;  %v4295_v13 = vmul.f32 %v2846_v33, %v3839_v11  ;;  %v640_v53 = vmul.f32 %v2852_v37, %v3833_v52  ;;  %v1466_v9 = vadd.f32 %v1434_v43, %v1398_v36 }
 0x107   : > { %v1344_v61 = vsel %vm718_vm2, %v4972_v6, %v1343_v3  ;;  %v504_v59 = vrot.slane %v395_v58, 1  ;;  %v4301_v42 = vmul.f32 %v2852_v37, %v3839_v11  ;;  %v1899_v27 = vrot.slane %v1776_v41, 2 }
 0x108   : > { %v926_v45 = vadd.f32 %v894_v8, %v858_v54  ;;  %v505_v57 = vrot.slane %v4295_v13, 1  ;;  %v749_v1 = vrot.slane %v640_v53, 2  ;;  %v879_v63 = vmul.f32 %v2854_v38, %v4064_v12  ;;  %v273_v54 = vld [vmem:[%s2839_s11 + $0x180] sm:$0xff] }
 0x109   : > { %v1710_v19 = vadd.f32 %v1616_v55, %v1466_v9  ;;  %v750_v29 = vrot.slane %v4301_v42, 2  ;;  %v953_v52 = vmul.f32 %v2856_v39, %v4064_v12  ;;  %v4314_v8 = vmul.f32 %v2856_v39, %v4067_v30 }
 0x10a   : > { %v1170_v50 = vadd.f32 %v1100_v23, %v926_v45  ;;  %v506_v43 = vsel %vm473_vm1, %v504_v59, %v505_v57  ;;  %v1197_v49 = vmul.f32 %v2859_v40, %v4064_v12  ;;  %v4320_v55 = vmul.f32 %v2859_v40, %v4067_v30 }
 0x10b   : > { %v1954_v0 = vadd.f32 %v1860_v16, %v1710_v19  ;;  %v598_v15 = vadd.f32 %v506_v43, %v353_v7  ;;  %v751_v14 = vsel %vm718_vm2, %v749_v1, %v750_v29  ;;  %v1061_v10 = vrot.slane %v953_v52, 1 }
 0x10c   : > { %v1414_v2 = vadd.f32 %v1344_v61, %v1170_v50  ;;  %v1062_v56 = vrot.slane %v4314_v8, 1  ;;  %v1305_v3 = vrot.slane %v1197_v49, 2  ;;  %v1306_v4 = vrot.slane %v4320_v55, 2 }
 0x10d   : > { %2464 = vmatmul.mubr.f32.gmra.mrb[10].mxu0 %v1954_v0  ;;  %v4973_v62 = vrot.slane %v4203_v24, 2  ;;  %v843_v16 = vadd.f32 %v751_v14, %v598_v15  ;;  %v1509_v36 = vmul.f32 %v2882_v51, %v2943_v20  ;;  %v1435_v58 = vmul.f32 %v2871_v47, %v2943_v20 }
 0x10e   : > { %v1482_v23 = vadd.f32 %v1450_v31, %v1414_v2  ;;  %v1063_v7 = vsel %vm473_vm1, %v1061_v10, %v1062_v56  ;;  %v4340_v6 = vmul.f32 %v2882_v51, %v2952_v26  ;;  %v1753_v24 = vmul.f32 %v2939_v18, %v2943_v20  ;;  %v274_v31 = vld [vmem:[%s2839_s11 + $0x188] sm:$0xff] }
 0x10f   : > { %v1900_v41 = vsel %vm718_vm2, %v4973_v62, %v1899_v27  ;;  %v911_v53 = vadd.f32 %v879_v63, %v843_v16  ;;  %v1617_v9 = vrot.slane %v1509_v36, 1  ;;  %v4347_v45 = vmul.f32 %v2939_v18, %v2952_v26 }
 0x110   : > { %v1726_v61 = vadd.f32 %v1656_v25, %v1482_v23  ;;  %v1307_v59 = vsel %vm718_vm2, %v1305_v3, %v1306_v4  ;;  %v1618_v27 = vrot.slane %v4340_v6, 1  ;;  %v1861_v1 = vrot.slane %v1753_v24, 2 }
 0x111   : > { %v4354_v19 = vsel %vm279_vm0, %v273_v54, 0.0  ;;  %v1155_v52 = vadd.f32 %v1063_v7, %v911_v53  ;;  %v1862_v25 = vrot.slane %v4347_v45, 2  ;;  %v4358_v63 = vsel %vm279_vm0, %v274_v31, 0.0 }
 0x112   : > { %v1970_v50 = vadd.f32 %v1900_v41, %v1726_v61  ;;  %v369_v43 = vmul.f32 %v2844_v32, %v3907_v28  ;;  %v419_v49 = vmul.f32 %v2846_v33, %v3907_v28  ;;  %v4366_v0 = vmul.f32 %v2846_v33, %v3913_v21 }
 0x113   : > { %v664_v2 = vmul.f32 %v2852_v37, %v3907_v28  ;;  %v1399_v15 = vadd.f32 %v1307_v59, %v1155_v52  ;;  %v1619_v14 = vsel %vm473_vm1, %v1617_v9, %v1618_v27  ;;  %v1863_v10 = vsel %vm718_vm2, %v1861_v1, %v1862_v25 }
 0x114   : > { %2488 = vmatmul.mubr.f32.gmra.mrb[10].mxu1 %v1970_v50  ;;  %v4378_v3 = vmul.f32 %v2852_v37, %v3913_v21  ;;  %v544_v23 = vrot.slane %v419_v49, 1  ;;  %v4920_v62 = vrot.slane %v4366_v0, 1  ;;  %v977_v28 = vmul.f32 %v2856_v39, %v4137_v48 }
 0x115   : > { %v789_v41 = vrot.slane %v664_v2, 2  ;;  %v1467_v16 = vadd.f32 %v1435_v58, %v1399_v15  ;;  %v4386_v54 = vmul.f32 %v2856_v39, %v4181_v60  ;;  %v1221_v7 = vmul.f32 %v2859_v40, %v4137_v48 }
 0x116   : > { %v4918_v36 = vrot.slane %v4378_v3, 2  ;;  %v546_v24 = vsel %vm473_vm1, %v544_v23, %v4920_v62  ;;  %v895_v31 = vmul.f32 %v2854_v38, %v4137_v48  ;;  %v1101_v61 = vrot.slane %v977_v28, 1 }
 0x117   : > { %v4397_v58 = vmul.f32 %v2859_v40, %v4181_v60  ;;  %v1711_v53 = vadd.f32 %v1619_v14, %v1467_v16  ;;  %v614_v9 = vadd.f32 %v546_v24, %v369_v43  ;;  %v4917_v1 = vrot.slane %v4386_v54, 1 }
 0x118   : > { %v791_v59 = vsel %vm718_vm2, %v789_v41, %v4918_v36  ;;  %v1345_v50 = vrot.slane %v1221_v7, 2  ;;  %v1533_v49 = vmul.f32 %v2882_v51, %v4354_v19  ;;  %v4408_v2 = vmul.f32 %v2882_v51, %v4358_v63 }
 0x119   : > { %v4916_v52 = vrot.slane %v4397_v58, 2  ;;  %v1955_v15 = vadd.f32 %v1863_v10, %v1711_v53  ;;  %v859_v23 = vadd.f32 %v791_v59, %v614_v9  ;;  %v1451_v43 = vmul.f32 %v2871_v47, %v4354_v19 }
 0x11a   : > { %v1777_v14 = vmul.f32 %v2939_v18, %v4354_v19  ;;  %v1103_v41 = vsel %vm473_vm1, %v1101_v61, %v4917_v1  ;;  %v1657_v28 = vrot.slane %v1533_v49, 1  ;;  %v4915_v16 = vrot.slane %v4408_v2, 1  ;;  %v275_v1 = vld [vmem:[%s2839_s11 + $0x190] sm:$0x3] }
 0x11b   : > { %v4420_v7 = vmul.f32 %v2939_v18, %v4358_v63  ;;  %2466 = vmatprep.mubr.f32.mxu0 %v1955_v15  ;;  %v927_v10 = vadd.f32 %v895_v31, %v859_v23  ;;  %v1347_v24 = vsel %vm718_vm2, %v1345_v50, %v4916_v52  ;;  %v397_v9 = vmul.f32 %v2846_v33, %v3980_v46 }
 0x11c   : > { %v1901_v53 = vrot.slane %v1777_v14, 2  ;;  %v1659_v61 = vsel %vm473_vm1, %v1657_v28, %v4915_v16  ;;  %v354_v49 = vmul.f32 %v2844_v32, %v3839_v11  ;;  %v642_v31 = vmul.f32 %v2852_v37, %v3980_v46 }
 0x11d   : > { %v4919_v59 = vrot.slane %v4420_v7, 2  ;;  %v1171_v15 = vadd.f32 %v1103_v41, %v927_v10  ;;  %v507_v23 = vrot.slane %v397_v9, 1  ;;  %v955_v50 = vmul.f32 %v2856_v39, %v4207_v5 }
 0x11e   : > { %v1199_v14 = vmul.f32 %v2859_v40, %v4207_v5  ;;  %v752_v16 = vrot.slane %v642_v31, 2  ;;  %v880_v52 = vmul.f32 %v2854_v38, %v4067_v30  ;;  %v1511_v11 = vmul.f32 %v2882_v51, %v3086_v17 }
 0x11f   : > { %v1903_v28 = vsel %vm718_vm2, %v1901_v53, %v4919_v59  ;;  %v1415_v46 = vadd.f32 %v1347_v24, %v1171_v15  ;;  %v508_v41 = vsel %vm473_vm1, %v505_v57, %v507_v23  ;;  %v1064_v10 = vrot.slane %v955_v50, 1 }
 0x120   : > { %v1308_v9 = vrot.slane %v1199_v14, 2  ;;  %v599_v36 = vadd.f32 %v508_v41, %v354_v49  ;;  %v753_v53 = vsel %vm718_vm2, %v750_v29, %v752_v16  ;;  %v1620_v31 = vrot.slane %v1511_v11, 1 }
 0x121   : > { %v1755_v59 = vmul.f32 %v2939_v18, %v3086_v17  ;;  %v1483_v62 = vadd.f32 %v1451_v43, %v1415_v46  ;;  %v1065_v24 = vsel %vm473_vm1, %v1062_v56, %v1064_v10  ;;  %v1436_v57 = vmul.f32 %v2871_v47, %v2952_v26 }
 0x122   : > { %v1309_v13 = vsel %vm718_vm2, %v1306_v4, %v1308_v9  ;;  %v844_v49 = vadd.f32 %v753_v53, %v599_v36  ;;  %v1621_v42 = vsel %vm473_vm1, %v1618_v27, %v1620_v31  ;;  %v4467_v16 = vsel %vm279_vm0, %v275_v1, 0.0 }
 0x123   : > { %v1864_v29 = vrot.slane %v1755_v59, 2  ;;  %v1727_v43 = vadd.f32 %v1659_v61, %v1483_v62  ;;  %v370_v8 = vmul.f32 %v2844_v32, %v3913_v21  ;;  %v421_v55 = vmul.f32 %v2846_v33, %v4023_v44 }
 0x124   : > { %v666_v56 = vmul.f32 %v2852_v37, %v4023_v44  ;;  %v912_v4 = vadd.f32 %v880_v52, %v844_v49  ;;  %v896_v6 = vmul.f32 %v2854_v38, %v4181_v60  ;;  %v979_v27 = vmul.f32 %v2856_v39, %v4245_v22 }
 0x125   : > { %v1223_v36 = vmul.f32 %v2859_v40, %v4245_v22  ;;  %v1971_v62 = vadd.f32 %v1903_v28, %v1727_v43  ;;  %v1865_v21 = vsel %vm718_vm2, %v1862_v25, %v1864_v29  ;;  %v547_v1 = vrot.slane %v421_v55, 1 }
 0x126   : > { %v792_v61 = vrot.slane %v666_v56, 2  ;;  %v1156_v59 = vadd.f32 %v1065_v24, %v912_v4  ;;  %v1104_v15 = vrot.slane %v979_v27, 1  ;;  %v1535_v52 = vmul.f32 %v2882_v51, %v4467_v16 }
 0x127   : > { %v1348_v44 = vrot.slane %v1223_v36, 2  ;;  %2490 = vmatprep.mubr.f32.mxu1 %v1971_v62  ;;  %v4974_v23 = vrot.slane %v4366_v0, 1  ;;  %v4975_v14 = vrot.slane %v4378_v3, 2  ;;  %v1452_v45 = vmul.f32 %v2871_v47, %v4358_v63 }
 0x128   : > { %v1779_v25 = vmul.f32 %v2939_v18, %v4467_v16  ;;  %v1400_v11 = vadd.f32 %v1309_v13, %v1156_v59  ;;  %v4976_v41 = vrot.slane %v4386_v54, 1  ;;  %v355_v0 = vmul.f32 %v2844_v32, %v4064_v12  ;;  %v4510_v13 = vpop.f32.mrb[0].mxu0 }
 0x129   : > { %v548_v50 = vsel %vm473_vm1, %v4974_v23, %v547_v1  ;;  %v793_v28 = vsel %vm718_vm2, %v4975_v14, %v792_v61  ;;  %v4977_v9 = vrot.slane %v4397_v58, 2  ;;  %v1660_v53 = vrot.slane %v1535_v52, 1  ;;  %v4518_v43 = vpop.f32.mrb[1].mxu0 }
 0x12a   : > { %v615_v46 = vadd.f32 %v548_v50, %v370_v8  ;;  %v1105_v10 = vsel %vm473_vm1, %v4976_v41, %v1104_v15  ;;  %v398_v31 = vmul.f32 %v2846_v33, %v4064_v12  ;;  %v4508_v24 = vmul.f32 %v2846_v33, %v4067_v30 }
 0x12b   : > { %v1349_v3 = vsel %vm718_vm2, %v4977_v9, %v1348_v44  ;;  %v1468_v54 = vadd.f32 %v1436_v57, %v1400_v11  ;;  %v643_v29 = vmul.f32 %v2852_v37, %v4064_v12  ;;  %v4516_v58 = vmul.f32 %v2852_v37, %v4067_v30  ;;  %v276_v9 = vld [vmem:[%s2839_s11 + $0x198] sm:$0xff] }
 0x12c   : > { %v860_v49 = vadd.f32 %v793_v28, %v615_v46  ;;  %v4978_v8 = vrot.slane %v4408_v2, 1  ;;  %v1904_v56 = vrot.slane %v1779_v25, 2  ;;  %v509_v4 = vrot.slane %v398_v31, 1 }
 0x12d   : > { %v510_v27 = vrot.slane %v4508_v24, 1  ;;  %v1712_v36 = vadd.f32 %v1621_v42, %v1468_v54  ;;  %v754_v62 = vrot.slane %v643_v29, 2  ;;  %v755_v1 = vrot.slane %v4516_v58, 2 }
 0x12e   : > { %v1661_v55 = vsel %vm473_vm1, %v4978_v8, %v1660_v53  ;;  %v928_v57 = vadd.f32 %v896_v6, %v860_v49  ;;  %v881_v61 = vmul.f32 %v2854_v38, %v2943_v20  ;;  %v956_v2 = vmul.f32 %v2856_v39, %v2943_v20  ;;  %v277_v49 = vld [vmem:[%s2839_s11 + $0x1a0] sm:$0xff] }
 0x12f   : > { %v511_v12 = vsel %vm473_vm1, %v509_v4, %v510_v27  ;;  %v4534_v59 = vmul.f32 %v2856_v39, %v2952_v26  ;;  %v1956_v15 = vadd.f32 %v1865_v21, %v1712_v36  ;;  %v756_v44 = vsel %vm718_vm2, %v754_v62, %v755_v1 }
 0x130   : > { %v1172_v42 = vadd.f32 %v1105_v10, %v928_v57  ;;  %v600_v6 = vadd.f32 %v511_v12, %v355_v0  ;;  %v1066_v52 = vrot.slane %v956_v2, 1  ;;  %v1200_v50 = vmul.f32 %v2859_v40, %v2943_v20 }
 0x131   : > { %v1067_v23 = vrot.slane %v4534_v59, 1  ;;  %v4544_v14 = vmul.f32 %v2859_v40, %v2952_v26  ;;  %2467 = vmatmul.mubr.f32.gmra.mrb[12].mxu0 %v1956_v15  ;;  %v4979_v28 = vrot.slane %v4420_v7, 2  ;;  %v1512_v46 = vmul.f32 %v2882_v51, %v2962_v34 }
 0x132   : > { %v1416_v21 = vadd.f32 %v1349_v3, %v1172_v42  ;;  %v845_v11 = vadd.f32 %v756_v44, %v600_v6  ;;  %v1310_v20 = vrot.slane %v1200_v50, 2  ;;  %v4557_v0 = vmul.f32 %v2882_v51, %v2965_v35  ;;  %v4560_v3 = vpop.f32.mrb[0].mxu1 }
 0x133   : > { %v1905_v25 = vsel %vm718_vm2, %v4979_v28, %v1904_v56  ;;  %v1068_v41 = vsel %vm473_vm1, %v1066_v52, %v1067_v23  ;;  %v1311_v10 = vrot.slane %v4544_v14, 2  ;;  %v1622_v31 = vrot.slane %v1512_v46, 1  ;;  %v4565_v29 = vpop.f32.mrb[1].mxu1 }
 0x134   : > { %v1484_v7 = vadd.f32 %v1452_v45, %v1416_v21  ;;  %v913_v53 = vadd.f32 %v881_v61, %v845_v11  ;;  %v1756_v54 = vmul.f32 %v2939_v18, %v2962_v34  ;;  %v1437_v56 = vmul.f32 %v2871_v47, %v2962_v34 }
 0x135   : > { %v1312_v8 = vsel %vm718_vm2, %v1310_v20, %v1311_v10  ;;  %v1623_v4 = vrot.slane %v4557_v0, 1  ;;  %v4575_v45 = vmul.f32 %v2939_v18, %v2965_v35  ;;  %v331_v12 = vsel %vm279_vm0, %v276_v9, 0.0 }
 0x136   : > { %v1728_v36 = vadd.f32 %v1661_v55, %v1484_v7  ;;  %v1157_v57 = vadd.f32 %v1068_v41, %v913_v53  ;;  %v1866_v62 = vrot.slane %v1756_v54, 2  ;;  %v4583_v15 = vsel %vm279_vm0, %v277_v49, 0.0 }
 0x137   : > { %v1624_v61 = vsel %vm473_vm1, %v1622_v31, %v1623_v4  ;;  %v1867_v2 = vrot.slane %v4575_v45, 2  ;;  %v422_v34 = vmul.f32 %v2846_v33, %v4137_v48  ;;  %v4589_v55 = vmul.f32 %v2846_v33, %v4181_v60 }
 0x138   : > { %v1972_v42 = vadd.f32 %v1905_v25, %v1728_v36  ;;  %v1401_v6 = vadd.f32 %v1312_v8, %v1157_v57  ;;  %v667_v44 = vmul.f32 %v2852_v37, %v4137_v48  ;;  %v371_v50 = vmul.f32 %v2844_v32, %v4137_v48 }
 0x139   : > { %v1868_v52 = vsel %vm718_vm2, %v1866_v62, %v1867_v2  ;;  %v549_v21 = vrot.slane %v422_v34, 1  ;;  %v4600_v28 = vmul.f32 %v2852_v37, %v4181_v60  ;;  %v550_v11 = vrot.slane %v4589_v55, 1 }
 0x13a   : > { %2491 = vmatmul.mubr.f32.gmra.mrb[12].mxu1 %v1972_v42  ;;  %v1469_v25 = vadd.f32 %v1437_v56, %v1401_v6  ;;  %v794_v46 = vrot.slane %v667_v44, 2  ;;  %v980_v41 = vmul.f32 %v2856_v39, %v4354_v19  ;;  %v4608_v9 = vmul.f32 %v2856_v39, %v4358_v63 }
 0x13b   : > { %v795_v20 = vrot.slane %v4600_v28, 2  ;;  %v1224_v48 = vmul.f32 %v2859_v40, %v4354_v19  ;;  %v4614_v7 = vmul.f32 %v2859_v40, %v4358_v63  ;;  %v551_v31 = vsel %vm473_vm1, %v549_v21, %v550_v11 }
 0x13c   : > { %v1713_v53 = vadd.f32 %v1624_v61, %v1469_v25  ;;  %v897_v54 = vmul.f32 %v2854_v38, %v4354_v19  ;;  %v1106_v49 = vrot.slane %v980_v41, 1  ;;  %v616_v8 = vadd.f32 %v551_v31, %v371_v50 }
 0x13d   : > { %v796_v56 = vsel %vm718_vm2, %v794_v46, %v795_v20  ;;  %v1107_v36 = vrot.slane %v4608_v9, 1  ;;  %v1350_v57 = vrot.slane %v1224_v48, 2  ;;  %v1351_v34 = vrot.slane %v4614_v7, 2 }
 0x13e   : > { %v1957_v62 = vadd.f32 %v1868_v52, %v1713_v53  ;;  %v1536_v61 = vmul.f32 %v2882_v51, %v331_v12  ;;  %v4629_v42 = vmul.f32 %v2882_v51, %v4583_v15  ;;  %v861_v6 = vadd.f32 %v796_v56, %v616_v8 }
 0x13f   : > { %v1780_v19 = vmul.f32 %v2939_v18, %v331_v12  ;;  %v4634_v44 = vmul.f32 %v2939_v18, %v4583_v15  ;;  %v1108_v52 = vsel %vm473_vm1, %v1106_v49, %v1107_v36  ;;  %v1352_v50 = vsel %vm718_vm2, %v1350_v57, %v1351_v34 }
 0x140   : > { %2469 = vmatprep.mubr.f32.mxu0 %v1957_v62  ;;  %v1453_v21 = vmul.f32 %v2871_v47, %v331_v12  ;;  %v929_v25 = vadd.f32 %v897_v54, %v861_v6  ;;  %v1662_v46 = vrot.slane %v1536_v61, 1  ;;  %v1663_v41 = vrot.slane %v4629_v42, 1 }
 0x141   : > { %v400_v48 = vmul.f32 %v2846_v33, %v4207_v5  ;;  %v1906_v53 = vrot.slane %v1780_v19, 2  ;;  %v356_v31 = vmul.f32 %v2844_v32, %v4067_v30  ;;  %v645_v49 = vmul.f32 %v2852_v37, %v4207_v5  ;;  %v4980_v5 = vld [vmem:[#allocation5_spill] sm:$0xff] }
 0x142   : > { %v958_v8 = vmul.f32 %v2856_v39, %v3086_v17  ;;  %v1173_v56 = vadd.f32 %v1108_v52, %v929_v25  ;;  %v1907_v12 = vrot.slane %v4634_v44, 2  ;;  %v1202_v57 = vmul.f32 %v2859_v40, %v3086_v17 }
 0x143   : > { %v512_v54 = vrot.slane %v400_v48, 1  ;;  %v757_v62 = vrot.slane %v645_v49, 2  ;;  %v1514_v19 = vmul.f32 %v2882_v51, %v4980_v5  ;;  %v1664_v52 = vsel %vm473_vm1, %v1662_v46, %v1663_v41 }
 0x144   : > { %v1069_v61 = vrot.slane %v958_v8, 1  ;;  %v1417_v6 = vadd.f32 %v1352_v50, %v1173_v56  ;;  %v882_v48 = vmul.f32 %v2854_v38, %v2952_v26  ;;  %v1908_v24 = vsel %vm718_vm2, %v1906_v53, %v1907_v12 }
 0x145   : > { %v513_v30 = vsel %vm473_vm1, %v510_v27, %v512_v54  ;;  %v758_v17 = vsel %vm718_vm2, %v755_v1, %v757_v62  ;;  %v1313_v27 = vrot.slane %v1202_v57, 2  ;;  %v1758_v58 = vmul.f32 %v2939_v18, %v4980_v5  ;;  %v278_v1 = vld [vmem:[%s2839_s11 + $0x1a8] sm:$0x3]  ;;  %s2608_s11 = scalar_lea.vmem %s2607_s10, 8192 }
 0x146   : > { %v601_v25 = vadd.f32 %v513_v30, %v356_v31  ;;  %v1485_v50 = vadd.f32 %v1453_v21, %v1417_v6  ;;  %v1070_v46 = vsel %vm473_vm1, %v1067_v23, %v1069_v61  ;;  %v424_v26 = vmul.f32 %v2846_v33, %v4245_v22  ;;  %p2610_p2 = scmp.lt.s32.totalorder %s2608_s11, %s2602_s5 }
 0x147   : > { %v1625_v31 = vrot.slane %v1514_v19, 1  ;;  %v372_v53 = vmul.f32 %v2844_v32, %v4181_v60  ;;  %v669_v8 = vmul.f32 %v2852_v37, %v4245_v22  ;;  %v982_v59 = vmul.f32 %v2856_v39, %v4467_v16  ;;  %v4697_v37 = vld [vmem:[%s4861_s3] ss:$0 sm:$0xff] }
 0x148   : > { %v846_v49 = vadd.f32 %v758_v17, %v601_v25  ;;  %v1729_v21 = vadd.f32 %v1664_v52, %v1485_v50  ;;  %v552_v54 = vrot.slane %v424_v26, 1  ;;  %v1226_v23 = vmul.f32 %v2859_v40, %v4467_v16  ;;  %p2611_p3 = por %p2610_p2, %p2609_p1 }
 0x149   : > { %v1314_v33 = vsel %vm718_vm2, %v1311_v10, %v1313_v27  ;;  %v333_v32 = vsel %vm279_vm0, %v278_v1, 0.0  ;;  %v797_v60 = vrot.slane %v669_v8, 2  ;;  %v1438_v39 = vmul.f32 %v2871_v47, %v2965_v35 }
 0x14a   : > { %v914_v56 = vadd.f32 %v882_v48, %v846_v49  ;;  %v1973_v57 = vadd.f32 %v1908_v24, %v1729_v21  ;;  %v553_v40 = vsel %vm473_vm1, %v550_v11, %v552_v54  ;;  %v1109_v16 = vrot.slane %v982_v59, 1  ;;  %p2612_p5 = pnand %p2611_p3, %p2605_p0 }
 0x14b   : > { %v1869_v14 = vrot.slane %v1758_v58, 2  ;;  %v617_v10 = vadd.f32 %v553_v40, %v372_v53  ;;  %v798_v62 = vsel %vm718_vm2, %v795_v20, %v797_v60  ;;  %v898_v61 = vmul.f32 %v2854_v38, %v4358_v63  ;;  %v2453_v63 = vpop.f32.mrb[2].mxu0 }
 0x14c   : > { %v1158_v22 = vadd.f32 %v1070_v46, %v914_v56  ;;  %2493 = vmatprep.mubr.f32.mxu1 %v1973_v57  ;;  %v1353_v30 = vrot.slane %v1226_v23, 2  ;;  %v1538_v5 = vmul.f32 %v2882_v51, %v333_v32  ;;  %v2070_v35 = vadd.f32 %v4510_v13, %v4697_v37 }
 0x14d   : > { %v1626_v55 = vsel %vm473_vm1, %v1623_v4, %v1625_v31  ;;  %v862_v11 = vadd.f32 %v798_v62, %v617_v10  ;;  %v1782_v19 = vmul.f32 %v2939_v18, %v333_v32  ;;  %v2150_v28 = vadd.f32 %v4560_v3, %v4697_v37  ;;  %v2074_v4 = vpop.f32.mrb[3].mxu0 }
 0x14e   : > { %v1402_v6 = vadd.f32 %v1314_v33, %v1158_v22  ;;  %v1110_v38 = vsel %vm473_vm1, %v1107_v36, %v1109_v16  ;;  %2224 = vst [vmem:[%s4721_s26 + $0x8] sm:$0xff] %v2070_v35  ;;  %v2065_v51 = vadd.f32 %v4697_v37, %v4518_v43  ;;  %v2145_v18 = vadd.f32 %v4697_v37, %v4565_v29 }
 0x14f   : > { %v1870_v13 = vsel %vm718_vm2, %v1867_v2, %v1869_v14  ;;  %v930_v0 = vadd.f32 %v898_v61, %v862_v11  ;;  %2240 = vst [vmem:[%s4721_s26 + $0x88] sm:$0xff] %v2150_v28  ;;  %v2080_v3 = vadd.f32 %v2453_v63, %v4697_v37  ;;  %v1354_v43 = vsel %vm718_vm2, %v1351_v34, %v1353_v30  ;;  %v2477_v34 = vpop.f32.mrb[2].mxu1 }
 0x150   : > { %v1470_v20 = vadd.f32 %v1438_v39, %v1402_v6  ;;  %v1665_v36 = vrot.slane %v1538_v5, 1  ;;  %2223 = vst [vmem:[%s4721_s26] sm:$0xff] %v2065_v51  ;;  %2239 = vst [vmem:[%s4721_s26 + $0x80] sm:$0xff] %v2145_v18  ;;  %v2075_v29 = vadd.f32 %v4697_v37, %v2074_v4  ;;  %v1454_v45 = vmul.f32 %v2871_v47, %v4583_v15  ;;  %v2154_v24 = vpop.f32.mrb[3].mxu1 }
 0x151   : > { %v1174_v52 = vadd.f32 %v1110_v38, %v930_v0  ;;  %2226 = vst [vmem:[%s4721_s26 + $0x18] sm:$0xff] %v2080_v3  ;;  %v1909_v25 = vrot.slane %v1782_v19, 2  ;;  %v2160_v50 = vadd.f32 %v2477_v34, %v4697_v37  ;;  %v2155_v15 = vadd.f32 %v4697_v37, %v2154_v24 }
 0x152   : > { %v1714_v9 = vadd.f32 %v1626_v55, %v1470_v20  ;;  %2225 = vst [vmem:[%s4721_s26 + $0x10] sm:$0xff] %v2075_v29  ;;  %v1666_v7 = vsel %vm473_vm1, %v1663_v41, %v1665_v36 }
 0x153   : > { %v1418_v17 = vadd.f32 %v1354_v43, %v1174_v52  ;;  %v1910_v47 = vsel %vm718_vm2, %v1907_v12, %v1909_v25  ;;  %2242 = vst [vmem:[%s4721_s26 + $0x98] sm:$0xff] %v2160_v50  ;;  %2241 = vst [vmem:[%s4721_s26 + $0x90] sm:$0xff] %v2155_v15 }
 0x154   : > { %v1958_v2 = vadd.f32 %v1870_v13, %v1714_v9 }
 0x155   : > { %v1486_v48 = vadd.f32 %v1454_v45, %v1418_v17 }
 0x156   : > { %2470 = vmatmul.mubr.f32.gmra.mrb[14].mxu0 %v1958_v2 }
 0x157   : > { %v1730_v27 = vadd.f32 %v1666_v7, %v1486_v48 }
 0x159   : > { %v1974_v42 = vadd.f32 %v1910_v47, %v1730_v27 }
 0x15b   : > { %2494 = vmatmul.mubr.f32.gmra.mrb[14].mxu1 %v1974_v42 }
 0x16b   : > { %v2456_v41 = vpop.f32.mrb[4].mxu0 }
 0x16c   : > { %v2090_v49 = vadd.f32 %v2456_v41, %v4697_v37  ;;  %v2084_v46 = vpop.f32.mrb[5].mxu0 }
 0x16d   : > { %v2085_v58 = vadd.f32 %v4697_v37, %v2084_v46 }
 0x16e   : > { %2228 = vst [vmem:[%s4721_s26 + $0x28] sm:$0xff] %v2090_v49 }
 0x16f   : > { %2227 = vst [vmem:[%s4721_s26 + $0x20] sm:$0xff] %v2085_v58 }
 0x173   : > { %v2480_v44 = vpop.f32.mrb[4].mxu1 }
 0x174   : > { %v2170_v12 = vadd.f32 %v2480_v44, %v4697_v37  ;;  %v2164_v1 = vpop.f32.mrb[5].mxu1 }
 0x175   : > { %v2165_v26 = vadd.f32 %v4697_v37, %v2164_v1 }
 0x176   : > { %2244 = vst [vmem:[%s4721_s26 + $0xa8] sm:$0xff] %v2170_v12 }
 0x177   : > { %2243 = vst [vmem:[%s4721_s26 + $0xa0] sm:$0xff] %v2165_v26 }
 0x192   : > { %v2459_v21 = vpop.f32.mrb[6].mxu0 }
 0x193   : > { %v2100_v31 = vadd.f32 %v2459_v21, %v4697_v37  ;;  %v2094_v53 = vpop.f32.mrb[7].mxu0 }
 0x194   : > { %v2095_v8 = vadd.f32 %v4697_v37, %v2094_v53 }
 0x195   : > { %2230 = vst [vmem:[%s4721_s26 + $0x38] sm:$0xff] %v2100_v31 }
 0x196   : > { %2229 = vst [vmem:[%s4721_s26 + $0x30] sm:$0xff] %v2095_v8 }
 0x199   : > { %v2483_v56 = vpop.f32.mrb[6].mxu1 }
 0x19a   : > { %v2180_v54 = vadd.f32 %v2483_v56, %v4697_v37  ;;  %v2174_v59 = vpop.f32.mrb[7].mxu1 }
 0x19b   : > { %v2175_v23 = vadd.f32 %v4697_v37, %v2174_v59 }
 0x19c   : > { %2246 = vst [vmem:[%s4721_s26 + $0xb8] sm:$0xff] %v2180_v54 }
 0x19d   : > { %2245 = vst [vmem:[%s4721_s26 + $0xb0] sm:$0xff] %v2175_v23 }
 0x1b8   : > { %v2462_v57 = vpop.f32.mrb[8].mxu0 }
 0x1b9   : > { %v2110_v33 = vadd.f32 %v2462_v57, %v4697_v37  ;;  %v2104_v32 = vpop.f32.mrb[9].mxu0 }
 0x1ba   : > { %v2105_v60 = vadd.f32 %v4697_v37, %v2104_v32 }
 0x1bb   : > { %2232 = vst [vmem:[%s4721_s26 + $0x48] sm:$0xff] %v2110_v33 }
 0x1bc   : > { %2231 = vst [vmem:[%s4721_s26 + $0x40] sm:$0xff] %v2105_v60 }
 0x1c0   : > { %v2486_v22 = vpop.f32.mrb[8].mxu1 }
 0x1c1   : > { %v2190_v39 = vadd.f32 %v2486_v22, %v4697_v37  ;;  %v2184_v40 = vpop.f32.mrb[9].mxu1 }
 0x1c2   : > { %v2185_v16 = vadd.f32 %v4697_v37, %v2184_v40 }
 0x1c3   : > { %2248 = vst [vmem:[%s4721_s26 + $0xc8] sm:$0xff] %v2190_v39 }
 0x1c4   : > { %2247 = vst [vmem:[%s4721_s26 + $0xc0] sm:$0xff] %v2185_v16 }
 0x1e0   : > { %v2465_v14 = vpop.f32.mrb[10].mxu0 }
 0x1e1   : > { %v2120_v10 = vadd.f32 %v2465_v14, %v4697_v37  ;;  %v2114_v62 = vpop.f32.mrb[11].mxu0 }
 0x1e2   : > { %v2115_v61 = vadd.f32 %v4697_v37, %v2114_v62 }
 0x1e3   : > { %2234 = vst [vmem:[%s4721_s26 + $0x58] sm:$0xff] %v2120_v10 }
 0x1e4   : > { %2233 = vst [vmem:[%s4721_s26 + $0x50] sm:$0xff] %v2115_v61 }
 0x1e7   : > { %v2489_v6 = vpop.f32.mrb[10].mxu1 }
 0x1e8   : > { %v2200_v30 = vadd.f32 %v2489_v6, %v4697_v37  ;;  %v2194_v5 = vpop.f32.mrb[11].mxu1 }
 0x1e9   : > { %v2195_v35 = vadd.f32 %v4697_v37, %v2194_v5 }
 0x1ea   : > { %2250 = vst [vmem:[%s4721_s26 + $0xd8] sm:$0xff] %v2200_v30 }
 0x1eb   : > { %2249 = vst [vmem:[%s4721_s26 + $0xd0] sm:$0xff] %v2195_v35 }
 0x204   : > { %v2468_v55 = vpop.f32.mrb[12].mxu0 }
 0x205   : > { %v2130_v11 = vadd.f32 %v2468_v55, %v4697_v37  ;;  %v2124_v19 = vpop.f32.mrb[13].mxu0 }
 0x206   : > { %v2125_v28 = vadd.f32 %v4697_v37, %v2124_v19 }
 0x207   : > { %2236 = vst [vmem:[%s4721_s26 + $0x68] sm:$0xff] %v2130_v11 }
 0x208   : > { %2235 = vst [vmem:[%s4721_s26 + $0x60] sm:$0xff] %v2125_v28 }
 0x20d   : > { %v2492_v20 = vpop.f32.mrb[12].mxu1 }
 0x20e   : > { %v2210_v38 = vadd.f32 %v2492_v20, %v4697_v37  ;;  %v2204_v51 = vpop.f32.mrb[13].mxu1 }
 0x20f   : > { %v2205_v18 = vadd.f32 %v4697_v37, %v2204_v51 }
 0x210   : > { %2252 = vst [vmem:[%s4721_s26 + $0xe8] sm:$0xff] %v2210_v38 }
 0x211   : > { %2251 = vst [vmem:[%s4721_s26 + $0xe0] sm:$0xff] %v2205_v18 }
 0x229   : > { %v2471_v63 = vpop.f32.mrb[14].mxu0 }
 0x22a   : > { %v2140_v13 = vadd.f32 %v2471_v63, %v4697_v37  ;;  %v2134_v0 = vpop.f32.mrb[15].mxu0 }
 0x22b   : > { %v2135_v3 = vadd.f32 %v4697_v37, %v2134_v0 }
 0x22c   : > { %2238 = vst [vmem:[%s4721_s26 + $0x78] sm:$0xff] %v2140_v13 }
 0x22d   : > { %2237 = vst [vmem:[%s4721_s26 + $0x70] sm:$0xff] %v2135_v3 }
 0x22e   : > { %v2495_v4 = vpop.f32.mrb[14].mxu1 }
 0x22f   : > { %v2220_v9 = vadd.f32 %v2495_v4, %v4697_v37  ;;  %v2214_v43 = vpop.f32.mrb[15].mxu1 }
 0x230   : > { %v2215_v36 = vadd.f32 %v4697_v37, %v2214_v43 }
 0x231   : > { %2254 = vst [vmem:[%s4721_s26 + $0xf8] sm:$0xff] %v2220_v9 }
 0x232   : > { %2253 = vst [vmem:[%s4721_s26 + $0xf0] sm:$0xff] %v2215_v36 }
 0x233   : > { %2615 = shalt.err (!%p2612_p5)
}
 0x234   : > { %s2616_s12 = scalar_lea.hbm %s4803_s8, 4096  ;;  %s2620_s21 = scalar_lea.hbm %s4862_s4, 8192 }
 0x235   : > { %p2617_p6 = scmp.ne.s32.totalorder %s4803_s8, %s2616_s12  ;;  %p2621_p10 = scmp.lt.u32.totalorder %s4803_s8, %s4862_s4 }
 0x236   : > { %p2622_p11 = scmp.lt.u32.totalorder %s2620_s21, %s2616_s12  ;;  %p2624_p13 = scmp.lt.u32.totalorder %s2616_s12, %s4803_s8 }
 0x237   : > { %p2618_p7 = pnand %p2617_p6, %p2750_p4 }
 0x238   : > { %p2623_p12 = por %p2622_p11, %p2621_p10 }
 0x239   : > { %p2619_p9 = pneg %p2618_p7 }
 0x23a   : > { %p2625_p0 = por %p2624_p13, %p2623_p12 }
 0x23c   : > { %p2626_p1 = pnand %p2625_p0, %p2619_p9 }
 0x23e   : > { %2629 = shalt.err (!%p2626_p1)
}
 0x23f   : > { %s2683_s26 = smov 128   ;;  %s2684_s29 = smov 8  }
 0x240   : > { %2545 = dma.vmem_to_hbm [thread:$0]  (%p2750_p4), %s4805_s30, 4096, %s4803_s8, %s4812_s18, %s2683_s26, %s2683_s26, %s2684_s29  }
 0x241 PF: > { %p2551_p2 = scmp.ge.s32.totalorder %s2680_s20, 2  ;;  %s2287_s6 = sand.u32 1, %s2660_s15  }
 0x242   : > { %s2288_s7 = scalar_lea.sflag [#allocation3], %s2287_s6 }
 0x243   : > { %p2548_p3 = pnand %p2551_p2, %p2757_p8 }
 0x245   : > { %2655 = dma.done.wait (!%p2548_p3), %s2288_s7, 4096  }
 0x246   : > { %2657 = vsyncadd (!%p2548_p3), %s2288_s7, 4294963200  ;;  %s17_s20 = sadd.s32 1, %s2680_s20   ;;  %s4981_s15 = smov %s2664_s16 }
 0x247   : > { %p14_p5 = scmp.ge.s32.totalorder %s17_s20, 4   ;;  %s4982_s16 = smov %s2668_s17 }
 0x248   : > { %s4983_s17 = smov %s2763_s28  ;;  %s4984_s18 = smov %s2676_s19 }
 0x249   : > { %s4985_s19 = smov %s4987_s23  ;;  %16 = sbr.rel (!%p14_p5) target bundleno = 4 (0x4), region = 71 }
 0x250   :  { %2293 = vsyncpa [#allocation3], 1 }
 0x251   :  { %2295 = vsyncpa [#allocation3 + $0x1], 1 }

</bundles_post_ra>
